<compile_context>
chip_gen: v5e
topology: v5e:2x2
jax: 0.10.0
libtpu: 0.0.40
codegen_flags: <defaults>
</compile_context>

<pallas_src>
import numpy as np
import jax
import jax.numpy as jnp
from jax.experimental import pallas as pl
from jax.experimental.pallas import tpu as pltpu


# ------------------------------ Pallas kernel -------------------------------

def _decoder_kernel(plane_ref,
                    c1_ref, d1_ref, b1_ref,
                    c2_ref, d2_ref, b2_ref,
                    c3_ref, d3_ref, b3_ref,
                    out_ref):
    """One grid step = G lane-batched batch elements.

    Activation layout everywhere is (Cin*H, G*W): rows = (channel, height),
    columns = G contiguous groups of W image columns.  Each ConvTranspose2d is
        out = sum_kw (C_kw @ x) @ D_kw + bias_col
    with the three C_kw stacked into one matmul (Ccat @ x) so the fat
    contraction dim K = Cin*H feeds the MXU first.
    """
    def conv_t(x2, c_ref, d_ref, b_ref):
        n_kw = d_ref.shape[0]
        rows = c_ref.shape[0] // n_kw          # per-kw (row-padded) Cout*Hout
        # Single big MXU matmul: (KW*rows, Cin*H) @ (Cin*H, G*W)
        y = jnp.dot(c_ref[...], x2, preferred_element_type=jnp.float32)
        acc = None
        for kw in range(n_kw):                 # static, tiny (3 taps)
            t = jnp.dot(y[kw * rows:(kw + 1) * rows].astype(d_ref.dtype),
                        d_ref[kw], preferred_element_type=jnp.float32)
            acc = t if acc is None else acc + t
        return acc + b_ref[...]                # (rows, G*Wout) + (rows, 1)

    h = conv_t(plane_ref[0], c1_ref, d1_ref, b1_ref)             # (144, G*25)
    h = conv_t(h.astype(c2_ref.dtype), c2_ref, d2_ref, b2_ref)   # (144, G*50)
    h = conv_t(h.astype(c3_ref.dtype), c3_ref, d3_ref, b3_ref)   # (40,  cols_pad)
    out_ref[0] = h.astype(out_ref.dtype)


# -------------------------------- wrapper ------------------------------------

def _const_spec(a):
    return pl.BlockSpec(a.shape, lambda g, _n=a.ndim: (0,) * _n)


def decoder_forward(x, kp):
    """x: (B, encoded_space_dim) -> (B, 1, 36, 99) (NCHW, matching PyTorch)."""
    B = x.shape[0]
    G = kp["group"]
    C0, H0, W0 = kp["unflatten"]
    Co, Ho, Wo = kp["final_chw"]
    NG = -(-B // G)                       # lane-batched grid steps
    Bp = NG * G
    xp = jnp.pad(x, ((0, Bp - B), (0, 0))) if Bp != B else x

    # Folded Linear(E->512)->Linear(512->1536) (exact: no nonlinearity between them),
    # rearranged into the grouped (C0*H0, G*W0) lane layout.  Tiny -> plain XLA matmul.
    lin = xp @ kp["wf"] + kp["bf"]                                    # (Bp, 1536)
    plane = lin.reshape(NG, G, C0 * H0, W0).transpose(0, 2, 1, 3)
    plane = plane.reshape(NG, C0 * H0, G * W0).astype(kp["c1"].dtype)

    consts = [kp[k] for k in ("c1", "d1", "b1", "c2", "d2", "b2", "c3", "d3", "b3")]
    rows_pad = kp["b3"].shape[0]          # 40  (36 padded to a sublane multiple)
    cols_pad = kp["d3"].shape[2]          # round_up(G*99, 128) -> lane-dense store

    out = pl.pallas_call(
        _decoder_kernel,
        out_shape=jax.ShapeDtypeStruct((NG, rows_pad, cols_pad), x.dtype),
        grid=(NG,),
        in_specs=[pl.BlockSpec((1, C0 * H0, G * W0), lambda g: (g, 0, 0))]
                 + [_const_spec(w) for w in consts],
        out_specs=pl.BlockSpec((1, rows_pad, cols_pad), lambda g: (g, 0, 0)),
        compiler_params=pltpu.CompilerParams(dimension_semantics=("parallel",)),
    )(plane, *consts)

    # Trim row/col padding, de-interleave the G lane-batched elements.
    out = out[:, :Co * Ho, :G * Wo]
    out = out.reshape(NG, Co, Ho, G, Wo).transpose(0, 3, 1, 2, 4)
    return out.reshape(Bp, Co, Ho, Wo)[:B]


# -------------------- one-time weight re-parameterisation --------------------

def _round_up(n, m):
    return -(-n // m) * m


def _conv_transpose_constants(w_ct, bias, H, W, stride, padding, output_padding):
    """Exact matrix form of a ConvTranspose2d acting on a (Cin*H, W) plane."""
    Cin, Cout, KH, KW = w_ct.shape
    sh, sw = stride
    ph, pw = padding
    oph, opw = output_padding
    Hout = (H - 1) * sh - 2 * ph + KH + oph
    Wout = (W - 1) * sw - 2 * pw + KW + opw
    pt, pleft = KH - 1 - ph, KW - 1 - pw
    # gather-form (spatially flipped) kernel: wf[kh, kw, co, ci]
    wf = np.transpose(w_ct, (2, 3, 1, 0))[::-1, ::-1]
    # dws[kw] : (W, Wout) -- W-dilation + padding + kw tap shift (0/1 entries)
    dws = np.zeros((KW, W, Wout), np.float32)
    for kw in range(KW):
        for iw in range(W):
            wo = pleft + iw * sw - kw
            if 0 <= wo < Wout:
                dws[kw, iw, wo] = 1.0
    # c[kw] : (Cout*Hout, Cin*H) -- channel mixing + H-dilation/padding + kh taps
    c = np.zeros((KW, Cout * Hout, Cin * H), np.float32)
    for kw in range(KW):
        for kh in range(KH):
            m = np.zeros((Hout, H), np.float32)
            for ih in range(H):
                ho = pt + ih * sh - kh
                if 0 <= ho < Hout:
                    m[ho, ih] = 1.0
            c[kw] += np.kron(wf[kh, kw].astype(np.float32), m)
    bcol = np.repeat(np.asarray(bias, np.float32), Hout)[:, None]   # (Cout*Hout, 1)
    return dws, c, bcol, Hout, Wout


def prepare_decoder_params(params, unflatten=(32, 4, 12), group=2,
                           const_dtype=jnp.bfloat16):
    """One-time exact folding of the Decoder weights into kernel operands."""
    C0, H0, W0 = unflatten
    w1 = np.asarray(params["w1"], np.float32)
    b1 = np.asarray(params["b1"], np.float32)
    w2 = np.asarray(params["w2"], np.float32)
    b2 = np.asarray(params["b2"], np.float32)
    # Linear -> Linear with no nonlinearity in between folds exactly.
    kp = {"wf": jnp.asarray(w1 @ w2), "bf": jnp.asarray(b1 @ w2 + b2),
          "group": int(group), "unflatten": (C0, H0, W0)}

    convs = [("1", "ct1", (2, 2), (0, 0), (0, 0)),
             ("2", "ct2", (2, 2), (1, 1), (1, 1)),
             ("3", "ct3", (2, 2), (1, 1), (1, 0))]
    H, W = H0, W0
    Cout = C0
    for idx, (tag, name, stride, pad, opad) in enumerate(convs):
        w_ct = np.asarray(params[name + "_w"], np.float32)
        bias = np.asarray(params[name + "_b"], np.float32)
        dws, c, bcol, Hout, Wout = _conv_transpose_constants(
            w_ct, bias, H, W, stride, pad, opad)
        KW = dws.shape[0]
        Cout = w_ct.shape[1]
        rows = Cout * Hout
        rows_pad = _round_up(rows, 8)        # sublane-aligned per-kw row slices
        last = idx == len(convs) - 1
        cols_pad = _round_up(group * Wout, 128) if last else group * Wout
        # Ccat: the KW left matrices stacked -> a single fat-K MXU matmul per layer.
        ccat = np.zeros((KW * rows_pad, c.shape[2]), np.float32)
        for kw in range(KW):
            ccat[kw * rows_pad: kw * rows_pad + rows] = c[kw]
        # Block-diagonal (over the G lane-batched elements) right matrices.
        dblk = np.zeros((KW, group * W, cols_pad), np.float32)
        for kw in range(KW):
            for g in range(group):
                dblk[kw, g * W:(g + 1) * W, g * Wout:(g + 1) * Wout] = dws[kw]
        bcp = np.zeros((rows_pad, 1), np.float32)
        bcp[:rows, 0] = bcol[:, 0]
        kp["c" + tag] = jnp.asarray(ccat, const_dtype)   # bf16: halves constant DMA
        kp["d" + tag] = jnp.asarray(dblk, const_dtype)   # 0/1 entries -> exact in bf16
        kp["b" + tag] = jnp.asarray(bcp, jnp.float32)
        H, W = Hout, Wout
    kp["final_chw"] = (Cout, H, W)
    return kp


# ----------------------------- numpy reference --------------------------------

def _ref_conv_transpose_nchw(x, w, b, stride, padding, output_padding):
    B, Cin, H, W = x.shape
    _, Cout, KH, KW = w.shape
    sh, sw = stride
    ph, pw = padding
    oph, opw = output_padding
    Hout = (H - 1) * sh - 2 * ph + KH + oph
    Wout = (W - 1) * sw - 2 * pw + KW + opw
    buf = np.zeros((B, Cout, Hout + 2 * ph, Wout + 2 * pw), np.float32)
    for ih in range(H):
        for iw in range(W):
            contrib = np.einsum("bi,iokl->bokl", x[:, :, ih, iw], w)
            buf[:, :, ih * sh:ih * sh + KH, iw * sw:iw * sw + KW] += contrib
    return buf[:, :, ph:ph + Hout, pw:pw + Wout] + b.reshape(1, Cout, 1, 1)


def _ref_forward(x, p):
    h = x @ p["w1"] + p["b1"]
    h = h @ p["w2"] + p["b2"]
    h = h.reshape(x.shape[0], 32, 4, 12)
    h = _ref_conv_transpose_nchw(h, p["ct1_w"], p["ct1_b"], (2, 2), (0, 0), (0, 0))
    h = _ref_conv_transpose_nchw(h, p["ct2_w"], p["ct2_b"], (2, 2), (1, 1), (1, 1))
    h = _ref_conv_transpose_nchw(h, p["ct3_w"], p["ct3_b"], (2, 2), (1, 1), (1, 0))
    return h


# ----------------------------------- main -------------------------------------

if __name__ == "__main__":
    # B=4 with G=2 lane-batched elements per grid step -> 2 "parallel" grid steps
    # (keeps both v7x TensorCores busy; on v5e/v6e it is 2 cheap serial steps).
    B, E, G = 4, 32, 2
    key = jax.random.PRNGKey(0)
    ks = jax.random.split(key, 11)
    params = {
        "w1": jax.random.normal(ks[0], (E, 512), jnp.float32) * 0.05,
        "b1": jax.random.normal(ks[1], (512,), jnp.float32) * 0.05,
        "w2": jax.random.normal(ks[2], (512, 1536), jnp.float32) * 0.05,
        "b2": jax.random.normal(ks[3], (1536,), jnp.float32) * 0.05,
        "ct1_w": jax.random.normal(ks[4], (32, 16, 3, 3), jnp.float32) * 0.05,
        "ct1_b": jax.random.normal(ks[5], (16,), jnp.float32) * 0.05,
        "ct2_w": jax.random.normal(ks[6], (16, 8, 3, 3), jnp.float32) * 0.05,
        "ct2_b": jax.random.normal(ks[7], (8,), jnp.float32) * 0.05,
        "ct3_w": jax.random.normal(ks[8], (8, 1, 3, 3), jnp.float32) * 0.05,
        "ct3_b": jax.random.normal(ks[9], (1,), jnp.float32) * 0.05,
    }
    x = jax.random.normal(ks[10], (B, E), jnp.float32)

    kp = prepare_decoder_params(params, group=G)        # exact folding, done once
    fwd = jax.jit(lambda xx: decoder_forward(xx, kp))
    out = jax.block_until_ready(fwd(x))
    assert out.shape == (B, 1, 36, 99), out.shape

    ref = _ref_forward(np.asarray(x), {k: np.asarray(v) for k, v in params.items()})
    # bf16 MXU passes (same as the default f32 matmul precision) -> loose-ish tolerance.
    np.testing.assert_allclose(np.asarray(out), ref, rtol=2e-2, atol=8e-3)

    print("KERNEL_OK")
</pallas_src>

<mosaic_0001>
module attributes {stable_mosaic.version = 11 : i64} {
  func.func @_decoder_kernel(%arg0: i32, %arg1: memref<1x128x24xbf16, #tpu.memory_space<vmem>>, %arg2: memref<432x128xbf16, #tpu.memory_space<vmem>>, %arg3: memref<3x24x50xbf16, #tpu.memory_space<vmem>>, %arg4: memref<144x1xf32, #tpu.memory_space<vmem>>, %arg5: memref<432x144xbf16, #tpu.memory_space<vmem>>, %arg6: memref<3x50x100xbf16, #tpu.memory_space<vmem>>, %arg7: memref<144x1xf32, #tpu.memory_space<vmem>>, %arg8: memref<120x144xbf16, #tpu.memory_space<vmem>>, %arg9: memref<3x100x256xbf16, #tpu.memory_space<vmem>>, %arg10: memref<40x1xf32, #tpu.memory_space<vmem>>, %arg11: memref<1x40x256xf32, #tpu.memory_space<vmem>>) attributes {dimension_semantics = [#tpu.dimension_semantics<parallel>], iteration_bounds = array<i64: 2>, scalar_prefetch = 0 : i64, scratch_operands = 0 : i64, tpu.core_type = #tpu.core_type<tc>, window_params = [{transform_indices = @transform_0, window_bounds = array<i64: 1, 128, 24>}, {pipeline_mode = #tpu.pipeline_mode<synchronous>, transform_indices = @transform_1, window_bounds = array<i64: 432, 128>}, {pipeline_mode = #tpu.pipeline_mode<synchronous>, transform_indices = @transform_2, window_bounds = array<i64: 3, 24, 50>}, {pipeline_mode = #tpu.pipeline_mode<synchronous>, transform_indices = @transform_3, window_bounds = array<i64: 144, 1>}, {pipeline_mode = #tpu.pipeline_mode<synchronous>, transform_indices = @transform_4, window_bounds = array<i64: 432, 144>}, {pipeline_mode = #tpu.pipeline_mode<synchronous>, transform_indices = @transform_5, window_bounds = array<i64: 3, 50, 100>}, {pipeline_mode = #tpu.pipeline_mode<synchronous>, transform_indices = @transform_6, window_bounds = array<i64: 144, 1>}, {pipeline_mode = #tpu.pipeline_mode<synchronous>, transform_indices = @transform_7, window_bounds = array<i64: 120, 144>}, {pipeline_mode = #tpu.pipeline_mode<synchronous>, transform_indices = @transform_8, window_bounds = array<i64: 3, 100, 256>}, {pipeline_mode = #tpu.pipeline_mode<synchronous>, transform_indices = @transform_9, window_bounds = array<i64: 40, 1>}, {transform_indices = @transform_10, window_bounds = array<i64: 1, 40, 256>}]} {
    %c0 = arith.constant 0 : index
    %c0_0 = arith.constant 0 : index
    %c0_1 = arith.constant 0 : index
    %0 = vector.load %arg1[%c0, %c0_0, %c0_1] : memref<1x128x24xbf16, #tpu.memory_space<vmem>>, vector<1x128x24xbf16>
    %1 = vector.shape_cast %0 : vector<1x128x24xbf16> to vector<128x24xbf16>
    %c0_2 = arith.constant 0 : index
    %c0_3 = arith.constant 0 : index
    %2 = vector.load %arg2[%c0_2, %c0_3] : memref<432x128xbf16, #tpu.memory_space<vmem>>, vector<432x128xbf16>
    %cst = arith.constant dense<0.000000e+00> : vector<432x24xf32>
    %3 = tpu.matmul %2, %1, %cst {dimension_numbers = #tpu.dot_dimension_numbers<[1], [0], [0], [1], [0, 0, 1, 1], [], []>} : vector<432x128xbf16>, vector<128x24xbf16>, vector<432x24xf32> -> vector<432x24xf32>
    %4 = vector.extract_strided_slice %3 {offsets = [0, 0], sizes = [144, 24], strides = [1, 1]} : vector<432x24xf32> to vector<144x24xf32>
    %5 = arith.truncf %4 : vector<144x24xf32> to vector<144x24xbf16>
    %c0_4 = arith.constant 0 : index
    %c0_5 = arith.constant 0 : index
    %c0_6 = arith.constant 0 : index
    %6 = vector.load %arg3[%c0_4, %c0_5, %c0_6] : memref<3x24x50xbf16, #tpu.memory_space<vmem>>, vector<1x24x50xbf16>
    %7 = vector.shape_cast %6 : vector<1x24x50xbf16> to vector<24x50xbf16>
    %cst_7 = arith.constant dense<0.000000e+00> : vector<144x50xf32>
    %8 = tpu.matmul %5, %7, %cst_7 {dimension_numbers = #tpu.dot_dimension_numbers<[1], [0], [0], [1], [0, 0, 1, 1], [], []>} : vector<144x24xbf16>, vector<24x50xbf16>, vector<144x50xf32> -> vector<144x50xf32>
    %9 = vector.extract_strided_slice %3 {offsets = [144, 0], sizes = [144, 24], strides = [1, 1]} : vector<432x24xf32> to vector<144x24xf32>
    %10 = arith.truncf %9 : vector<144x24xf32> to vector<144x24xbf16>
    %c1 = arith.constant 1 : index
    %c0_8 = arith.constant 0 : index
    %c0_9 = arith.constant 0 : index
    %11 = vector.load %arg3[%c1, %c0_8, %c0_9] : memref<3x24x50xbf16, #tpu.memory_space<vmem>>, vector<1x24x50xbf16>
    %12 = vector.shape_cast %11 : vector<1x24x50xbf16> to vector<24x50xbf16>
    %cst_10 = arith.constant dense<0.000000e+00> : vector<144x50xf32>
    %13 = tpu.matmul %10, %12, %cst_10 {dimension_numbers = #tpu.dot_dimension_numbers<[1], [0], [0], [1], [0, 0, 1, 1], [], []>} : vector<144x24xbf16>, vector<24x50xbf16>, vector<144x50xf32> -> vector<144x50xf32>
    %14 = arith.addf %8, %13 : vector<144x50xf32>
    %15 = vector.extract_strided_slice %3 {offsets = [288, 0], sizes = [144, 24], strides = [1, 1]} : vector<432x24xf32> to vector<144x24xf32>
    %16 = arith.truncf %15 : vector<144x24xf32> to vector<144x24xbf16>
    %c2 = arith.constant 2 : index
    %c0_11 = arith.constant 0 : index
    %c0_12 = arith.constant 0 : index
    %17 = vector.load %arg3[%c2, %c0_11, %c0_12] : memref<3x24x50xbf16, #tpu.memory_space<vmem>>, vector<1x24x50xbf16>
    %18 = vector.shape_cast %17 : vector<1x24x50xbf16> to vector<24x50xbf16>
    %cst_13 = arith.constant dense<0.000000e+00> : vector<144x50xf32>
    %19 = tpu.matmul %16, %18, %cst_13 {dimension_numbers = #tpu.dot_dimension_numbers<[1], [0], [0], [1], [0, 0, 1, 1], [], []>} : vector<144x24xbf16>, vector<24x50xbf16>, vector<144x50xf32> -> vector<144x50xf32>
    %20 = arith.addf %14, %19 : vector<144x50xf32>
    %c0_14 = arith.constant 0 : index
    %c0_15 = arith.constant 0 : index
    %21 = vector.load %arg4[%c0_14, %c0_15] : memref<144x1xf32, #tpu.memory_space<vmem>>, vector<144x1xf32>
    %22 = vector.broadcast %21 : vector<144x1xf32> to vector<144x50xf32>
    %23 = arith.addf %20, %22 : vector<144x50xf32>
    %24 = arith.truncf %23 : vector<144x50xf32> to vector<144x50xbf16>
    %c0_16 = arith.constant 0 : index
    %c0_17 = arith.constant 0 : index
    %25 = vector.load %arg5[%c0_16, %c0_17] : memref<432x144xbf16, #tpu.memory_space<vmem>>, vector<432x144xbf16>
    %cst_18 = arith.constant dense<0.000000e+00> : vector<432x50xf32>
    %26 = tpu.matmul %25, %24, %cst_18 {dimension_numbers = #tpu.dot_dimension_numbers<[1], [0], [0], [1], [0, 0, 1, 1], [], []>} : vector<432x144xbf16>, vector<144x50xbf16>, vector<432x50xf32> -> vector<432x50xf32>
    %27 = vector.extract_strided_slice %26 {offsets = [0, 0], sizes = [144, 50], strides = [1, 1]} : vector<432x50xf32> to vector<144x50xf32>
    %28 = arith.truncf %27 : vector<144x50xf32> to vector<144x50xbf16>
    %c0_19 = arith.constant 0 : index
    %c0_20 = arith.constant 0 : index
    %c0_21 = arith.constant 0 : index
    %29 = vector.load %arg6[%c0_19, %c0_20, %c0_21] : memref<3x50x100xbf16, #tpu.memory_space<vmem>>, vector<1x50x100xbf16>
    %30 = vector.shape_cast %29 : vector<1x50x100xbf16> to vector<50x100xbf16>
    %cst_22 = arith.constant dense<0.000000e+00> : vector<144x100xf32>
    %31 = tpu.matmul %28, %30, %cst_22 {dimension_numbers = #tpu.dot_dimension_numbers<[1], [0], [0], [1], [0, 0, 1, 1], [], []>} : vector<144x50xbf16>, vector<50x100xbf16>, vector<144x100xf32> -> vector<144x100xf32>
    %32 = vector.extract_strided_slice %26 {offsets = [144, 0], sizes = [144, 50], strides = [1, 1]} : vector<432x50xf32> to vector<144x50xf32>
    %33 = arith.truncf %32 : vector<144x50xf32> to vector<144x50xbf16>
    %c1_23 = arith.constant 1 : index
    %c0_24 = arith.constant 0 : index
    %c0_25 = arith.constant 0 : index
    %34 = vector.load %arg6[%c1_23, %c0_24, %c0_25] : memref<3x50x100xbf16, #tpu.memory_space<vmem>>, vector<1x50x100xbf16>
    %35 = vector.shape_cast %34 : vector<1x50x100xbf16> to vector<50x100xbf16>
    %cst_26 = arith.constant dense<0.000000e+00> : vector<144x100xf32>
    %36 = tpu.matmul %33, %35, %cst_26 {dimension_numbers = #tpu.dot_dimension_numbers<[1], [0], [0], [1], [0, 0, 1, 1], [], []>} : vector<144x50xbf16>, vector<50x100xbf16>, vector<144x100xf32> -> vector<144x100xf32>
    %37 = arith.addf %31, %36 : vector<144x100xf32>
    %38 = vector.extract_strided_slice %26 {offsets = [288, 0], sizes = [144, 50], strides = [1, 1]} : vector<432x50xf32> to vector<144x50xf32>
    %39 = arith.truncf %38 : vector<144x50xf32> to vector<144x50xbf16>
    %c2_27 = arith.constant 2 : index
    %c0_28 = arith.constant 0 : index
    %c0_29 = arith.constant 0 : index
    %40 = vector.load %arg6[%c2_27, %c0_28, %c0_29] : memref<3x50x100xbf16, #tpu.memory_space<vmem>>, vector<1x50x100xbf16>
    %41 = vector.shape_cast %40 : vector<1x50x100xbf16> to vector<50x100xbf16>
    %cst_30 = arith.constant dense<0.000000e+00> : vector<144x100xf32>
    %42 = tpu.matmul %39, %41, %cst_30 {dimension_numbers = #tpu.dot_dimension_numbers<[1], [0], [0], [1], [0, 0, 1, 1], [], []>} : vector<144x50xbf16>, vector<50x100xbf16>, vector<144x100xf32> -> vector<144x100xf32>
    %43 = arith.addf %37, %42 : vector<144x100xf32>
    %c0_31 = arith.constant 0 : index
    %c0_32 = arith.constant 0 : index
    %44 = vector.load %arg7[%c0_31, %c0_32] : memref<144x1xf32, #tpu.memory_space<vmem>>, vector<144x1xf32>
    %45 = vector.broadcast %44 : vector<144x1xf32> to vector<144x100xf32>
    %46 = arith.addf %43, %45 : vector<144x100xf32>
    %47 = arith.truncf %46 : vector<144x100xf32> to vector<144x100xbf16>
    %c0_33 = arith.constant 0 : index
    %c0_34 = arith.constant 0 : index
    %48 = vector.load %arg8[%c0_33, %c0_34] : memref<120x144xbf16, #tpu.memory_space<vmem>>, vector<120x144xbf16>
    %cst_35 = arith.constant dense<0.000000e+00> : vector<120x100xf32>
    %49 = tpu.matmul %48, %47, %cst_35 {dimension_numbers = #tpu.dot_dimension_numbers<[1], [0], [0], [1], [0, 0, 1, 1], [], []>} : vector<120x144xbf16>, vector<144x100xbf16>, vector<120x100xf32> -> vector<120x100xf32>
    %50 = vector.extract_strided_slice %49 {offsets = [0, 0], sizes = [40, 100], strides = [1, 1]} : vector<120x100xf32> to vector<40x100xf32>
    %51 = arith.truncf %50 : vector<40x100xf32> to vector<40x100xbf16>
    %c0_36 = arith.constant 0 : index
    %c0_37 = arith.constant 0 : index
    %c0_38 = arith.constant 0 : index
    %52 = vector.load %arg9[%c0_36, %c0_37, %c0_38] : memref<3x100x256xbf16, #tpu.memory_space<vmem>>, vector<1x100x256xbf16>
    %53 = vector.shape_cast %52 : vector<1x100x256xbf16> to vector<100x256xbf16>
    %cst_39 = arith.constant dense<0.000000e+00> : vector<40x256xf32>
    %54 = tpu.matmul %51, %53, %cst_39 {dimension_numbers = #tpu.dot_dimension_numbers<[1], [0], [0], [1], [0, 0, 1, 1], [], []>} : vector<40x100xbf16>, vector<100x256xbf16>, vector<40x256xf32> -> vector<40x256xf32>
    %55 = vector.extract_strided_slice %49 {offsets = [40, 0], sizes = [40, 100], strides = [1, 1]} : vector<120x100xf32> to vector<40x100xf32>
    %56 = arith.truncf %55 : vector<40x100xf32> to vector<40x100xbf16>
    %c1_40 = arith.constant 1 : index
    %c0_41 = arith.constant 0 : index
    %c0_42 = arith.constant 0 : index
    %57 = vector.load %arg9[%c1_40, %c0_41, %c0_42] : memref<3x100x256xbf16, #tpu.memory_space<vmem>>, vector<1x100x256xbf16>
    %58 = vector.shape_cast %57 : vector<1x100x256xbf16> to vector<100x256xbf16>
    %cst_43 = arith.constant dense<0.000000e+00> : vector<40x256xf32>
    %59 = tpu.matmul %56, %58, %cst_43 {dimension_numbers = #tpu.dot_dimension_numbers<[1], [0], [0], [1], [0, 0, 1, 1], [], []>} : vector<40x100xbf16>, vector<100x256xbf16>, vector<40x256xf32> -> vector<40x256xf32>
    %60 = arith.addf %54, %59 : vector<40x256xf32>
    %61 = vector.extract_strided_slice %49 {offsets = [80, 0], sizes = [40, 100], strides = [1, 1]} : vector<120x100xf32> to vector<40x100xf32>
    %62 = arith.truncf %61 : vector<40x100xf32> to vector<40x100xbf16>
    %c2_44 = arith.constant 2 : index
    %c0_45 = arith.constant 0 : index
    %c0_46 = arith.constant 0 : index
    %63 = vector.load %arg9[%c2_44, %c0_45, %c0_46] : memref<3x100x256xbf16, #tpu.memory_space<vmem>>, vector<1x100x256xbf16>
    %64 = vector.shape_cast %63 : vector<1x100x256xbf16> to vector<100x256xbf16>
    %cst_47 = arith.constant dense<0.000000e+00> : vector<40x256xf32>
    %65 = tpu.matmul %62, %64, %cst_47 {dimension_numbers = #tpu.dot_dimension_numbers<[1], [0], [0], [1], [0, 0, 1, 1], [], []>} : vector<40x100xbf16>, vector<100x256xbf16>, vector<40x256xf32> -> vector<40x256xf32>
    %66 = arith.addf %60, %65 : vector<40x256xf32>
    %c0_48 = arith.constant 0 : index
    %c0_49 = arith.constant 0 : index
    %67 = vector.load %arg10[%c0_48, %c0_49] : memref<40x1xf32, #tpu.memory_space<vmem>>, vector<40x1xf32>
    %68 = vector.broadcast %67 : vector<40x1xf32> to vector<40x256xf32>
    %69 = arith.addf %66, %68 : vector<40x256xf32>
    %c0_50 = arith.constant 0 : index
    %c0_51 = arith.constant 0 : index
    %c0_52 = arith.constant 0 : index
    %70 = vector.load %arg11[%c0_50, %c0_51, %c0_52] : memref<1x40x256xf32, #tpu.memory_space<vmem>>, vector<1x40x256xf32>
    %71 = vector.shape_cast %70 : vector<1x40x256xf32> to vector<40x256xf32>
    %72 = vector.shape_cast %69 : vector<40x256xf32> to vector<1x40x256xf32>
    tpu.vector_store %arg11[%c0_50, %c0_51, %c0_52], %72 {strides = array<i32>} : memref<1x40x256xf32, #tpu.memory_space<vmem>>, vector<1x40x256xf32>,
    return
  }
  func.func @transform_0(%arg0: i32) -> (i32, i32, i32) {
    %c0_i32 = arith.constant 0 : i32
    %c0_i32_0 = arith.constant 0 : i32
    %c0_i32_1 = arith.constant 0 : i32
    return %arg0, %c0_i32, %c0_i32_0 : i32, i32, i32
  }
  func.func @transform_1(%arg0: i32) -> (i32, i32) {
    %c0_i32 = arith.constant 0 : i32
    %c0_i32_0 = arith.constant 0 : i32
    %c0_i32_1 = arith.constant 0 : i32
    return %c0_i32, %c0_i32_0 : i32, i32
  }
  func.func @transform_2(%arg0: i32) -> (i32, i32, i32) {
    %c0_i32 = arith.constant 0 : i32
    %c0_i32_0 = arith.constant 0 : i32
    %c0_i32_1 = arith.constant 0 : i32
    %c0_i32_2 = arith.constant 0 : i32
    return %c0_i32, %c0_i32_0, %c0_i32_1 : i32, i32, i32
  }
  func.func @transform_3(%arg0: i32) -> (i32, i32) {
    %c0_i32 = arith.constant 0 : i32
    %c0_i32_0 = arith.constant 0 : i32
    %c0_i32_1 = arith.constant 0 : i32
    return %c0_i32, %c0_i32_0 : i32, i32
  }
  func.func @transform_4(%arg0: i32) -> (i32, i32) {
    %c0_i32 = arith.constant 0 : i32
    %c0_i32_0 = arith.constant 0 : i32
    %c0_i32_1 = arith.constant 0 : i32
    return %c0_i32, %c0_i32_0 : i32, i32
  }
  func.func @transform_5(%arg0: i32) -> (i32, i32, i32) {
    %c0_i32 = arith.constant 0 : i32
    %c0_i32_0 = arith.constant 0 : i32
    %c0_i32_1 = arith.constant 0 : i32
    %c0_i32_2 = arith.constant 0 : i32
    return %c0_i32, %c0_i32_0, %c0_i32_1 : i32, i32, i32
  }
  func.func @transform_6(%arg0: i32) -> (i32, i32) {
    %c0_i32 = arith.constant 0 : i32
    %c0_i32_0 = arith.constant 0 : i32
    %c0_i32_1 = arith.constant 0 : i32
    return %c0_i32, %c0_i32_0 : i32, i32
  }
  func.func @transform_7(%arg0: i32) -> (i32, i32) {
    %c0_i32 = arith.constant 0 : i32
    %c0_i32_0 = arith.constant 0 : i32
    %c0_i32_1 = arith.constant 0 : i32
    return %c0_i32, %c0_i32_0 : i32, i32
  }
  func.func @transform_8(%arg0: i32) -> (i32, i32, i32) {
    %c0_i32 = arith.constant 0 : i32
    %c0_i32_0 = arith.constant 0 : i32
    %c0_i32_1 = arith.constant 0 : i32
    %c0_i32_2 = arith.constant 0 : i32
    return %c0_i32, %c0_i32_0, %c0_i32_1 : i32, i32, i32
  }
  func.func @transform_9(%arg0: i32) -> (i32, i32) {
    %c0_i32 = arith.constant 0 : i32
    %c0_i32_0 = arith.constant 0 : i32
    %c0_i32_1 = arith.constant 0 : i32
    return %c0_i32, %c0_i32_0 : i32, i32
  }
  func.func @transform_10(%arg0: i32) -> (i32, i32, i32) {
    %c0_i32 = arith.constant 0 : i32
    %c0_i32_0 = arith.constant 0 : i32
    %c0_i32_1 = arith.constant 0 : i32
    return %arg0, %c0_i32, %c0_i32_0 : i32, i32, i32
  }
}

</mosaic_0001>

<bundles_post_ra>
// kernel: _lambda_.1
= control target key start
LH: loop header
LB: loop body
LE: loop exit
PB: predicated region body
PF: predicated region fallthrough
CT: control target
= control target key end

     0   :  { %15 = vsyncpa [#allocation3], 0  ;;  %s5757_s0 = inlined_call_operand.vmem [shape: bf16[2,128,24], index: 0, kind: input, shape index: {}]   ;;  %s5758_s1 = inlined_call_operand.hbm [shape: bf16[432,128], index: 1, kind: input, shape index: {}]   ;;  %s5759_s2 = inlined_call_operand.hbm [shape: bf16[3,24,50], index: 2, kind: input, shape index: {}]   ;;  %s5760_s3 = inlined_call_operand.hbm [shape: f32[144,1], index: 3, kind: input, shape index: {}]   ;;  %s5761_s4 = inlined_call_operand.vmem [shape: bf16[432,144], index: 4, kind: input, shape index: {}]   ;;  %s5762_s5 = inlined_call_operand.hbm [shape: bf16[3,50,100], index: 5, kind: input, shape index: {}]   ;;  %s5763_s6 = inlined_call_operand.vmem [shape: f32[144,1], index: 6, kind: input, shape index: {}]   ;;  %s5764_s7 = inlined_call_operand.hbm [shape: bf16[120,144], index: 7, kind: input, shape index: {}]   ;;  %s5765_s8 = inlined_call_operand.vmem [shape: bf16[3,100,256], index: 8, kind: input, shape index: {}]   ;;  %s5766_s9 = inlined_call_operand.vmem [shape: f32[40,1], index: 9, kind: input, shape index: {}]   ;;  %s5767_s10 = inlined_call_operand.vmem [shape: f32[2,40,256], index: 10, kind: output, shape index: {}]  }
   0x1   :  { %16 = vsyncpa [#allocation5], 0 }
   0x2   :  { %17 = vsyncpa [#allocation8], 0  ;;  %s4540_s13 = smov 0  }
   0x3 LB: > { %s4546_s14 = sadd.s32 4294967295, %s4473_s13   ;;  %p3328_p0 = scmp.ge.s32.totalorder %s4473_s13, 1  ;;  %s4473_s13 = sphi %s4540_s13, %s23_s13  }
   0x4   : > { %p269_p1 = scmp.lt.s32.totalorder %s4473_s13, 3  ;;  %p4274_p2 = scmp.eq.s32.totalorder %s4546_s14, 0 }
   0x5   : > { %s294_s17 = sshll.u32 %s5759_s2, 4  ;;  %s325_s21 = sshll.u32 %s5762_s5, 4  ;;  %s295_s17 = int_to_ptr.hbm [resolvable:$true] %s294_s17  ;;  %s326_s21 = int_to_ptr.hbm [resolvable:$true] %s325_s21 }
   0x6   : > { %p4554_p3 = pnand %p3328_p0, %p269_p1  ;;  %s4475_s22 = smov [#allocation4]  }
   0x7   : > { %s296_s23 = sshll.u32 %s4475_s22, 4  ;;  %s4476_s25 = smov [#allocation7]   ;;  %s297_s23 = int_to_ptr.vmem [resolvable:$true] %s296_s23 }
   0x8   : > { %p4258_p4 = pneg %p4554_p3  ;;  %s327_s26 = sshll.u32 %s4476_s25, 4  ;;  %s328_s26 = int_to_ptr.vmem [resolvable:$true] %s327_s26 }
   0x9   : > { %s280_s29 = sshll.u32 %s5758_s1, 4  ;;  %s4477_s30 = smov 64   ;;  %s281_s29 = int_to_ptr.hbm [resolvable:$true] %s280_s29 }
   0xa   : > { %p4565_p5 = pnand %p4274_p2, %p4258_p4  ;;  %s4478_s11 = smov 4  }
   0xb   : > { %s4479_s12 = smov [#allocation2]   ;;  %s308_s20 = sshll.u32 %s5760_s3, 4  ;;  %s309_s20 = int_to_ptr.hbm [resolvable:$true] %s308_s20 }
   0xc   : > { %4264 = dma.hbm_to_vmem [thread:$0]  (!%p4565_p5), %s295_s17, 576, %s297_s23, [#allocation5], %s4477_s30, %s4477_s30, %s4478_s11  }
   0xd   : > { %4270 = dma.hbm_to_vmem [thread:$0]  (!%p4565_p5), %s326_s21, 1344, %s328_s26, [#allocation8], %s4477_s30, %s4477_s30, %s4478_s11  }
   0xe   : > { %s282_s15 = sshll.u32 %s4479_s12, 4  ;;  %s4480_s22 = smov [#allocation6]   ;;  %s283_s15 = int_to_ptr.vmem [resolvable:$true] %s282_s15 }
   0xf   : > { %4261 = dma.hbm_to_vmem [thread:$0]  (!%p4565_p5), %s281_s29, 3456, %s283_s15, [#allocation3], %s4477_s30, %s4477_s30, %s4478_s11  }
  0x10   : > { %s310_s25 = sshll.u32 %s4480_s22, 4  ;;  %s342_s17 = sshll.u32 %s5764_s7, 4  ;;  %s311_s25 = int_to_ptr.vmem [resolvable:$true] %s310_s25  ;;  %s343_s17 = int_to_ptr.hbm [resolvable:$true] %s342_s17 }
  0x11   : > { %s4481_s21 = smov 128   ;;  %s4482_s23 = smov 8  }
  0x12   : > { %4267 = dma.hbm_to_vmem [thread:$0]  (!%p4565_p5), %s309_s20, 2304, %s311_s25, [#allocation5], %s4481_s21, %s4481_s21, %s4482_s23  }
  0x13   : > { %s4483_s26 = smov [#allocation9]   ;;  %374 = sbr.rel (%p4554_p3) target bundleno = 2038 (0x7f6), region = 60 }
  0x14   : > { %s344_s12 = sshll.u32 %s4483_s26, 4  ;;  %s345_s12 = int_to_ptr.vmem [resolvable:$true] %s344_s12 }
  0x15   : > { %4273 = dma.hbm_to_vmem [thread:$0]  (!%p4565_p5), %s343_s17, 1920, %s345_s12, [#allocation8], %s4481_s21, %s4481_s21, %s4482_s23  }
  0x18   : > { %4460 = dma.done.wait (%p4274_p2), [#allocation3], 3456  }
  0x19   : > { %4462 = vsyncadd (%p4274_p2), [#allocation3], 4294963840 }
  0x1a   : > { %4464 = dma.done.wait (%p4274_p2), [#allocation5], 2880  }
  0x1b   : > { %4466 = vsyncadd (%p4274_p2), [#allocation5], 4294964416 }
  0x1c   : > { %4468 = dma.done.wait (%p4274_p2), [#allocation8], 3264  }
  0x1d   : > { %4470 = vsyncadd (%p4274_p2), [#allocation8], 4294964032  ;;  %p433_p6 = scmp.lt.s32.totalorder %s4546_s14, 1  ;;  %v4092_v8 = vld [vmem:[#allocation2] sm:$0xff]  ;;  %v4093_v9 = vld [vmem:[#allocation2 + $0x8] sm:$0xff]  ;;  %vm930_vm0 = vcmask 1043456  }
  0x1e   : > { %v4094_v10 = vld [vmem:[#allocation2 + $0x10] sm:$0xff]  ;;  %v4095_v11 = vld [vmem:[#allocation2 + $0x18] sm:$0xff]  ;;  %v4096_v12 = vld [vmem:[#allocation2 + $0x20] sm:$0xff]  ;;  %vm902_vm1 = vcmask 195584   ;;  %vm1637_vm2 = vcmask 130048   ;;  %vm2089_vm3 = vcmask 1040384  }
  0x1f   : > { %s5777_s14 = smov (!%p433_p6, %s4546_s14), 1  ;;  %v4097_v13 = vld [vmem:[#allocation2 + $0x28] sm:$0xff]  ;;  %v4098_v14 = vld [vmem:[#allocation2 + $0x30] sm:$0xff]  ;;  %v4099_v15 = vld [vmem:[#allocation2 + $0x38] sm:$0xff]  ;;  %vm2061_vm4 = vcmask 408576   ;;  %vm2839_vm5 = vcmask 1041408  }
  0x20   : > { %s4083_s18 = sshll.u32 %s5777_s14, 6  ;;  %v4100_v16 = vld [vmem:[#allocation2 + $0x40] sm:$0xff]  ;;  %v4101_v20 = vld [vmem:[#allocation2 + $0x48] sm:$0xff]  ;;  %v4102_v24 = vld [vmem:[#allocation2 + $0x50] sm:$0xff]  ;;  %vm2829_vm6 = vcmask 818176   ;;  %s4237_s29 = smul.u32 80, %s5777_s14 }
  0x21   : > { %s437_s30 = scalar_lea.vmem %s5757_s0, %s4083_s18  ;;  %v4103_v28 = vld [vmem:[#allocation2 + $0x58] sm:$0xff]  ;;  %v4104_v32 = vld [vmem:[#allocation2 + $0x60] sm:$0xff]  ;;  %v4105_v36 = vld [vmem:[#allocation2 + $0x68] sm:$0xff] }
  0x22   : > { %v4091_v0 = vld [vmem:[%s437_s30 + $0x38] sm:$0xff]  ;;  %v4090_v1 = vld [vmem:[%s437_s30 + $0x30] sm:$0xff]  ;;  %v4089_v2 = vld [vmem:[%s437_s30 + $0x28] sm:$0xff]  ;;  %s5741_s15 = scalar_lea.vmem %s5767_s10, %s4237_s29 }
  0x23   : > { %724 = vmatpush.bf16.msra.mxu0 %v4091_v0  ;;  %v4088_v3 = vld [vmem:[%s437_s30 + $0x20] sm:$0xff]  ;;  %v4087_v4 = vld [vmem:[%s437_s30 + $0x18] sm:$0xff]  ;;  %v4086_v5 = vld [vmem:[%s437_s30 + $0x10] sm:$0xff] }
  0x24   : > { %v4085_v6 = vld [vmem:[%s437_s30 + $0x8] sm:$0xff]  ;;  %v4084_v7 = vld [vmem:[%s437_s30] sm:$0xff]  ;;  %v4106_v40 = vld [vmem:[#allocation2 + $0x70] sm:$0xff] }
  0x25   : > { %v892_v44 = vld [vmem:[#allocation4 + $0x14] sm:$0xf]  ;;  %v4107_v45 = vld [vmem:[#allocation2 + $0x78] sm:$0xff]  ;;  %v4120_v50 = vld [vmem:[#allocation4 + $0xc] sm:$0xff] }
  0x26   : > { %v898_v46 = vunpack.c.l.b16 %v892_v44  ;;  %v4108_v53 = vld [vmem:[#allocation2 + $0x80] sm:$0xff]  ;;  %v4109_v57 = vld [vmem:[#allocation2 + $0x88] sm:$0xff]  ;;  %v4110_v61 = vld [vmem:[#allocation2 + $0x90] sm:$0xff] }
  0x27   : > { %725 = vmatpush.bf16.msra.mxu0 %v4090_v1  ;;  %v4111_v1 = vld [vmem:[#allocation2 + $0x98] sm:$0xff]  ;;  %v1218_v44 = vld [vmem:[#allocation6 + $0x68] sm:$0xff] }
  0x28   : > { %v900_v48 = vpack.c.b16 %v898_v46, %v898_v46  ;;  %v1093_v46 = vld [vmem:[#allocation4 + $0x20] sm:$0xf] }
  0x2a   : > { %v932_v49 = vsel %vm930_vm0, %v900_v48, 0  ;;  %v4116_v48 = vld [vmem:[#allocation2 + $0xc0] sm:$0xff] }
  0x2b   : > { %726 = vmatpush.bf16.msra.mxu0 %v4089_v2  ;;  %940 = vmatpush.bf16.msra.mxu1 %v932_v49 }
  0x2c   : > { %4235 = vmatpush.bf16.msra.mxu2 %v932_v49 }
  0x2f   : > { %727 = vmatpush.bf16.msra.mxu0 %v4088_v3  ;;  %941 = vmatpush.bf16.msra.mxu1 %v4120_v50 }
  0x30   : > { %4236 = vmatpush.bf16.msra.mxu2 %v4120_v50  ;;  %v1099_v50 = vunpack.c.l.b16 %v1093_v46 }
  0x33   : > { %728 = vmatpush.bf16.msra.mxu0 %v4087_v4 }
  0x37   : > { %729 = vmatpush.bf16.msra.mxu0 %v4086_v5  ;;  %v4112_v5 = vld [vmem:[#allocation2 + $0xa0] sm:$0xff] }
  0x3b   : > { %730 = vmatpush.bf16.msra.mxu0 %v4085_v6 }
  0x3f   : > { %731 = vmatpush.bf16.msra.mxu0 %v4084_v7 }
  0x42   : > { %732 = vmatmul.bf16.vlgmr.msra.gmra.mxu0 %v4092_v8 }
  0x52   : > { %737 = vmatmul.bf16.gmra.mxu0 %v4093_v9  ;;  %v4113_v9 = vld [vmem:[#allocation2 + $0xa8] sm:$0xff] }
  0x62   : > { %742 = vmatmul.bf16.gmra.mxu0 %v4094_v10 }
  0x72   : > { %747 = vmatmul.bf16.gmra.mxu0 %v4095_v11 }
  0x82   : > { %752 = vmatmul.bf16.gmra.mxu0 %v4096_v12 }
  0x92   : > { %757 = vmatmul.bf16.gmra.mxu0 %v4097_v13  ;;  %v4114_v13 = vld [vmem:[#allocation2 + $0xb0] sm:$0xff] }
  0xa2   : > { %762 = vmatmul.bf16.gmra.mxu0 %v4098_v14 }
  0xb2   : > { %767 = vmatmul.bf16.gmra.mxu0 %v4099_v15 }
  0xbf   : > { %v4610_v17 = vpop.f32.mrf.mxu0 }
  0xc2   : > { %772 = vmatmul.bf16.gmra.mxu0 %v4100_v16 }
  0xc7   : > { %v4612_v18 = vpop.f32.mrf.mxu0 }
  0xc8   : > { %v868_v19 = vpack.c.bf16 %v4612_v18, %v4610_v17  ;;  %v1206_v17 = vld [vmem:[#allocation6 + $0x8] sm:$0xff] }
  0xcf   : > { %v4616_v21 = vpop.f32.mrf.mxu0 }
  0xd2   : > { %777 = vmatmul.bf16.gmra.mxu0 %v4101_v20  ;;  %v4115_v20 = vld [vmem:[#allocation2 + $0xb8] sm:$0xff] }
  0xd7   : > { %v4618_v22 = vpop.f32.mrf.mxu0 }
  0xd8   : > { %v869_v23 = vpack.c.bf16 %v4618_v22, %v4616_v21  ;;  %v2406_v21 = vld [vmem:[%s5763_s6 + $0x70] sm:$0xff] }
  0xdf   : > { %v4622_v25 = vpop.f32.mrf.mxu0 }
  0xe2   : > { %782 = vmatmul.bf16.gmra.mxu0 %v4102_v24 }
  0xe7   : > { %v4624_v26 = vpop.f32.mrf.mxu0 }
  0xe8   : > { %v870_v27 = vpack.c.bf16 %v4624_v26, %v4622_v25 }
  0xef   : > { %v4628_v29 = vpop.f32.mrf.mxu0 }
  0xf2   : > { %787 = vmatmul.bf16.gmra.mxu0 %v4103_v28  ;;  %v1217_v28 = vld [vmem:[#allocation6 + $0x60] sm:$0xff] }
  0xf7   : > { %v4630_v30 = vpop.f32.mrf.mxu0 }
  0xf8   : > { %v871_v31 = vpack.c.bf16 %v4630_v30, %v4628_v29  ;;  %v2399_v29 = vld [vmem:[%s5763_s6 + $0x38] sm:$0xff] }
  0xff   : > { %v4634_v33 = vpop.f32.mrf.mxu0 }
 0x102   : > { %792 = vmatmul.bf16.gmra.mxu0 %v4104_v32  ;;  %v4484_v32 = vmov 0  }
 0x103   : > { %4303 = vset.pattern.permute.xlu1 %v4484_v32  ;;  %4302 = vset.pattern.permute.xlu0 %v4484_v32 }
 0x104   : > { %1285 = vperm.xlu1 %4303, %v1217_v28   ;;  %4304 = vset.pattern.permute.xlu2 %v4484_v32  ;;  %v1221_v32 = vld [vmem:[#allocation6 + $0x80] sm:$0xff] }
 0x107   : > { %v4636_v34 = vpop.f32.mrf.mxu0 }
 0x108   : > { %v872_v35 = vpack.c.bf16 %v4636_v34, %v4634_v33  ;;  %v2395_v33 = vld [vmem:[%s5763_s6 + $0x18] sm:$0xff]  ;;  %v2393_v34 = vld [vmem:[%s5763_s6 + $0x8] sm:$0xff] }
 0x10c   : > { %1290 = vperm.xlu1 %4303, %v1218_v44   ;;  %v1208_v44 = vld [vmem:[#allocation6 + $0x18] sm:$0xff] }
 0x10f   : > { %v4640_v37 = vpop.f32.mrf.mxu0 }
 0x112   : > { %797 = vmatmul.bf16.gmra.mxu0 %v4105_v36 }
 0x117   : > { %v4642_v38 = vpop.f32.mrf.mxu0 }
 0x118   : > { %v873_v39 = vpack.c.bf16 %v4642_v38, %v4640_v37  ;;  %v2398_v38 = vld [vmem:[%s5763_s6 + $0x30] sm:$0xff] }
 0x11f   : > { %v4646_v41 = vpop.f32.mrf.mxu0 }
 0x122   : > { %802 = vmatmul.bf16.gmra.mxu0 %v4106_v40 }
 0x127   : > { %v4648_v42 = vpop.f32.mrf.mxu0 }
 0x128   : > { %v874_v43 = vpack.c.bf16 %v4648_v42, %v4646_v41  ;;  %v2392_v41 = vld [vmem:[%s5763_s6] sm:$0xff] }
 0x12f   : > { %v4652_v47 = vpop.f32.mrf.mxu0 }
 0x132   : > { %807 = vmatmul.bf16.gmra.mxu0 %v4107_v45  ;;  %v879_v45 = vld [vmem:[#allocation4 + $0x8] sm:$0xf] }
 0x133   : > { %v993_v49 = vunpack.c.l.b16 %v879_v45  ;;  %v1207_v45 = vld [vmem:[#allocation6 + $0x10] sm:$0xff] }
 0x137   : > { %v4655_v51 = vpop.f32.mrf.mxu0 }
 0x138   : > { %v875_v52 = vpack.c.bf16 %v4655_v51, %v4652_v47 }
 0x13f   : > { %v4659_v54 = vpop.f32.mrf.mxu0 }
 0x142   : > { %812 = vmatmul.bf16.gmra.mxu0 %v4108_v53 }
 0x147   : > { %v4661_v55 = vpop.f32.mrf.mxu0 }
 0x148   : > { %v876_v56 = vpack.c.bf16 %v4661_v55, %v4659_v54 }
 0x14f   : > { %v778_v58 = vpop.f32.mrf.mxu0 }
 0x152   : > { %817 = vmatmul.bf16.gmra.mxu0 %v4109_v57  ;;  %v995_v57 = vpack.c.b16 %v993_v49, %v993_v49 }
 0x157   : > { %v780_v59 = vpop.f32.mrf.mxu0 }
 0x158   : > { %v880_v60 = vpack.c.bf16 %v780_v59, %v778_v58  ;;  %v1101_v58 = vpack.c.b16 %v1099_v50, %v1099_v50  ;;  %v1025_v59 = vsel %vm930_vm0, %v995_v57, 0  ;;  %v2405_v50 = vld [vmem:[%s5763_s6 + $0x68] sm:$0xff] }
 0x159   : > { %1033 = vmatpush.bf16.msrb.mxu2 %v1025_v59  ;;  %v2396_v59 = vld [vmem:[%s5763_s6 + $0x20] sm:$0xff] }
 0x15a   : > { %3488 = vmatmul.msk.bf16.vlgmr.msra.gmra.mxu1 %vm902_vm1, %v880_v60  ;;  %v1131_v60 = vsel %vm930_vm0, %v1101_v58, 0  ;;  %v2401_v58 = vld [vmem:[%s5763_s6 + $0x48] sm:$0xff] }
 0x15b   : > { %1139 = vmatpush.bf16.msra.mxu3 %v1131_v60  ;;  %v2394_v60 = vld [vmem:[%s5763_s6 + $0x10] sm:$0xff] }
 0x15f   : > { %v783_v62 = vpop.f32.mrf.mxu0 }
 0x162   : > { %822 = vmatmul.bf16.gmra.mxu0 %v4110_v61  ;;  %v1214_v61 = vld [vmem:[#allocation6 + $0x48] sm:$0xff] }
 0x163   : > { %1270 = vperm.xlu1 %4303, %v1214_v61  }
 0x167   : > { %v785_v63 = vpop.f32.mrf.mxu0 }
 0x168   : > { %v881_v0 = vpack.c.bf16 %v785_v63, %v783_v62  ;;  %v4119_v62 = vld [vmem:[#allocation4] sm:$0xff]  ;;  %v4121_v63 = vld [vmem:[#allocation4 + $0x18] sm:$0xff] }
 0x169   : > { %1034 = vmatpush.bf16.msrb.mxu2 %v4119_v62  ;;  %1140 = vmatpush.bf16.msra.mxu3 %v4121_v63  ;;  %v2404_v62 = vld [vmem:[%s5763_s6 + $0x60] sm:$0xff] }
 0x16a   : > { %3489 = vmatmul.msk.bf16.gmra.mxu1 %vm902_vm1, %v881_v0 }
 0x16f   : > { %v788_v2 = vpop.f32.mrf.mxu0 }
 0x172   : > { %827 = vmatmul.bf16.gmra.mxu0 %v4111_v1 }
 0x177   : > { %v790_v3 = vpop.f32.mrf.mxu0 }
 0x178   : > { %v882_v4 = vpack.c.bf16 %v790_v3, %v788_v2  ;;  %v1219_v2 = vld [vmem:[#allocation6 + $0x70] sm:$0xff]  ;;  %v1209_v3 = vld [vmem:[#allocation6 + $0x20] sm:$0xff] }
 0x179   : > { %1295 = vperm.xlu0 %4302, %v1219_v2   ;;  %1245 = vperm.xlu1 %4303, %v1209_v3   ;;  %v3171_v2 = vld [vmem:[%s5766_s9] sm:$0xff]  ;;  %v3174_v3 = vld [vmem:[%s5766_s9 + $0x18] sm:$0xff] }
 0x17a   : > { %3490 = vmatmul.msk.bf16.gmra.mxu1 %vm902_vm1, %v882_v4  ;;  %v4117_v4 = vld [vmem:[#allocation2 + $0xc8] sm:$0xff] }
 0x17f   : > { %v793_v6 = vpop.f32.mrf.mxu0 }
 0x182   : > { %832 = vmatmul.bf16.gmra.mxu0 %v4112_v5 }
 0x187   : > { %v795_v7 = vpop.f32.mrf.mxu0 }
 0x188   : > { %v883_v8 = vpack.c.bf16 %v795_v7, %v793_v6  ;;  %v1215_v6 = vld [vmem:[#allocation6 + $0x50] sm:$0xff]  ;;  %v1220_v7 = vld [vmem:[#allocation6 + $0x78] sm:$0xff] }
 0x189   : > { %1275 = vperm.xlu2 %4304, %v1215_v6   ;;  %1300 = vperm.xlu0 %4302, %v1220_v7   ;;  %v2397_v6 = vld [vmem:[%s5763_s6 + $0x28] sm:$0xff]  ;;  %v3175_v7 = vld [vmem:[%s5766_s9 + $0x20] sm:$0xff] }
 0x18a   : > { %3491 = vmatmul.msk.bf16.gmra.mxu1 %vm902_vm1, %v883_v8  ;;  %v1222_v8 = vld [vmem:[#allocation6 + $0x88] sm:$0xff] }
 0x18b   : > { %1310 = vperm.xlu1 %4303, %v1222_v8  }
 0x18f   : > { %v798_v10 = vpop.f32.mrf.mxu0 }
 0x192   : > { %837 = vmatmul.bf16.gmra.mxu0 %v4113_v9 }
 0x197   : > { %v800_v11 = vpop.f32.mrf.mxu0 }
 0x198   : > { %v884_v12 = vpack.c.bf16 %v800_v11, %v798_v10  ;;  %v1216_v11 = vld [vmem:[#allocation6 + $0x58] sm:$0xff] }
 0x199   : > { %1280 = vperm.xlu2 %4304, %v1216_v11   ;;  %v2409_v11 = vld [vmem:[%s5763_s6 + $0x88] sm:$0xff] }
 0x19a   : > { %3492 = vmatmul.msk.bf16.gmra.mxu1 %vm902_vm1, %v884_v12  ;;  %v1213_v12 = vld [vmem:[#allocation6 + $0x40] sm:$0xff] }
 0x19b   : > { %1265 = vperm.xlu0 %4302, %v1213_v12  }
 0x19f   : > { %v803_v14 = vpop.f32.mrf.mxu0 }
 0x1a2   : > { %842 = vmatmul.bf16.gmra.mxu0 %v4114_v13  ;;  %v1205_v13 = vld [vmem:[#allocation6] sm:$0xff] }
 0x1a3   : > { %1225 = vperm.xlu1 %4303, %v1205_v13  }
 0x1a7   : > { %v805_v15 = vpop.f32.mrf.mxu0 }
 0x1a8   : > { %v885_v16 = vpack.c.bf16 %v805_v15, %v803_v14  ;;  %v4118_v14 = vld [vmem:[#allocation2 + $0xd0] sm:$0xff] }
 0x1aa   : > { %3493 = vmatmul.msk.bf16.gmra.mxu1 %vm902_vm1, %v885_v16  ;;  %v1212_v16 = vld [vmem:[#allocation6 + $0x38] sm:$0xff] }
 0x1ab   : > { %1260 = vperm.xlu0 %4302, %v1212_v16  }
 0x1af   : > { %v808_v24 = vpop.f32.mrf.mxu0 }
 0x1b2   : > { %847 = vmatmul.bf16.gmra.mxu0 %v4115_v20  ;;  %v1211_v20 = vld [vmem:[#allocation6 + $0x30] sm:$0xff] }
 0x1b3   : > { %1255 = vperm.xlu2 %4304, %v1211_v20   ;;  %1305 = vperm.xlu0 %4302, %v1221_v32  }
 0x1b7   : > { %v810_v36 = vpop.f32.mrf.mxu0 }
 0x1b8   : > { %v886_v40 = vpack.c.bf16 %v810_v36, %v808_v24  ;;  %v1210_v36 = vld [vmem:[#allocation6 + $0x28] sm:$0xff] }
 0x1ba   : > { %3494 = vmatmul.msk.bf16.gmra.mxu1 %vm902_vm1, %v886_v40 }
 0x1bb   : > { %1250 = vperm.xlu2 %4304, %v1210_v36   ;;  %1240 = vperm.xlu0 %4302, %v1208_v44  }
 0x1bf   : > { %v813_v53 = vpop.f32.mrf.mxu0 }
 0x1c2   : > { %852 = vmatmul.bf16.gmra.mxu0 %v4116_v48 }
 0x1c3   : > { %1235 = vperm.xlu2 %4304, %v1207_v45   ;;  %2482 = vperm.xlu0 %4302, %v2406_v21  }
 0x1c7   : > { %v815_v0 = vpop.f32.mrf.mxu0 }
 0x1c8   : > { %v887_v1 = vpack.c.bf16 %v815_v0, %v813_v53  ;;  %v2400_v53 = vld [vmem:[%s5763_s6 + $0x40] sm:$0xff]  ;;  %v2403_v0 = vld [vmem:[%s5763_s6 + $0x58] sm:$0xff] }
 0x1ca   : > { %3495 = vmatmul.msk.bf16.gmra.mxu1 %vm902_vm1, %v887_v1  ;;  %v2408_v1 = vld [vmem:[%s5763_s6 + $0x80] sm:$0xff] }
 0x1cb   : > { %1230 = vperm.xlu2 %4304, %v1206_v17   ;;  %2477 = vperm.xlu0 %4302, %v2405_v50  }
 0x1cf   : > { %v818_v5 = vpop.f32.mrf.mxu0 }
 0x1d2   : > { %857 = vmatmul.bf16.gmra.mxu0 %v4117_v4 }
 0x1d3   : > { %2452 = vperm.xlu0 %4302, %v2400_v53   ;;  %2472 = vperm.xlu2 %4304, %v2404_v62  }
 0x1d7   : > { %v820_v9 = vpop.f32.mrf.mxu0  ;;  %v943_v8 = vpop.f32.mrf.mxu1 }
 0x1d8   : > { %v888_v10 = vpack.c.bf16 %v820_v9, %v818_v5 }
 0x1da   : > { %3496 = vmatmul.msk.bf16.vlgmr.msra.gmra.mxu2 %vm902_vm1, %v888_v10 }
 0x1db   : > { %2447 = vperm.xlu0 %4302, %v2399_v29   ;;  %2467 = vperm.xlu2 %4304, %v2403_v0  }
 0x1df   : > { %v823_v15 = vpop.f32.mrf.mxu0 }
 0x1e2   : > { %862 = vmatmul.bf16.gmra.mxu0 %v4118_v14 }
 0x1e3   : > { %2422 = vperm.xlu0 %4302, %v2394_v60   ;;  %2442 = vperm.xlu2 %4304, %v2398_v38  }
 0x1e7   : > { %v825_v24 = vpop.f32.mrf.mxu0 }
 0x1e8   : > { %v1081_v28 = vpack.c.bf16 %v825_v24, %v823_v15  ;;  %v3173_v15 = vld [vmem:[%s5766_s9 + $0x10] sm:$0xff] }
 0x1ea   : > { %3501 = vmatmul.msk.bf16.vlgmr.msrb.gmra.mxu2 %vm902_vm1, %v868_v19  ;;  %3514 = vmatmul.msk.bf16.vlgmr.msra.gmra.mxu3 %vm902_vm1, %v1081_v28 }
 0x1eb   : > { %2417 = vperm.xlu0 %4302, %v2393_v34   ;;  %2437 = vperm.xlu2 %4304, %v2397_v6  }
 0x1ef   : > { %v828_v40 = vpop.f32.mrf.mxu0 }
 0x1f3   : > { %3178 = vperm.xlu0 %4302, %v3171_v2   ;;  %2412 = vperm.xlu2 %4304, %v2392_v41  }
 0x1f7   : > { %v830_v46 = vpop.f32.mrf.mxu0 }
 0x1f8   : > { %v1082_v48 = vpack.c.bf16 %v830_v46, %v828_v40 }
 0x1fa   : > { %3502 = vmatmul.msk.bf16.gmra.mxu2 %vm902_vm1, %v869_v23  ;;  %3515 = vmatmul.msk.bf16.gmra.mxu3 %vm902_vm1, %v1082_v48  ;;  %v2407_v23 = vld [vmem:[%s5763_s6 + $0x78] sm:$0xff] }
 0x1fb   : > { %2487 = vperm.xlu1 %4303, %v2407_v23   ;;  %3193 = vperm.xlu0 %4302, %v3174_v3  }
 0x1fc   : > { %2497 = vperm.xlu2 %4304, %v2409_v11  }
 0x1ff   : > { %v833_v18 = vpop.f32.mrf.mxu0 }
 0x204   : > { %3188 = vperm.xlu2 %4304, %v3173_v15  }
 0x207   : > { %v835_v19 = vpop.f32.mrf.mxu0 }
 0x208   : > { %v1083_v49 = vpack.c.bf16 %v835_v19, %v833_v18 }
 0x20a   : > { %3503 = vmatmul.msk.bf16.gmra.mxu2 %vm902_vm1, %v870_v27  ;;  %3516 = vmatmul.msk.bf16.gmra.mxu3 %vm902_vm1, %v1083_v49  ;;  %v2402_v27 = vld [vmem:[%s5763_s6 + $0x50] sm:$0xff] }
 0x20b   : > { %2462 = vperm.xlu1 %4303, %v2402_v27  }
 0x20f   : > { %v838_v22 = vpop.f32.mrf.mxu0 }
 0x213   : > { %2457 = vperm.xlu1 %4303, %v2401_v58  }
 0x217   : > { %v840_v25 = vpop.f32.mrf.mxu0 }
 0x218   : > { %v1084_v26 = vpack.c.bf16 %v840_v25, %v838_v22 }
 0x21a   : > { %3504 = vmatmul.msk.bf16.gmra.mxu2 %vm902_vm1, %v871_v31  ;;  %3517 = vmatmul.msk.bf16.gmra.mxu3 %vm902_vm1, %v1084_v26 }
 0x21b   : > { %2432 = vperm.xlu1 %4303, %v2396_v59  }
 0x21f   : > { %v843_v57 = vpop.f32.mrf.mxu0 }
 0x223   : > { %2427 = vperm.xlu1 %4303, %v2395_v33  }
 0x227   : > { %v845_v30 = vpop.f32.mrf.mxu0 }
 0x228   : > { %v1085_v31 = vpack.c.bf16 %v845_v30, %v843_v57 }
 0x22a   : > { %3505 = vmatmul.msk.bf16.gmra.mxu2 %vm902_vm1, %v872_v35  ;;  %3518 = vmatmul.msk.bf16.gmra.mxu3 %vm902_vm1, %v1085_v31 }
 0x22b   : > { %2492 = vperm.xlu1 %4303, %v2408_v1  }
 0x22f   : > { %v848_v61 = vpop.f32.mrf.mxu0 }
 0x237   : > { %v850_v35 = vpop.f32.mrf.mxu0 }
 0x238   : > { %v1086_v63 = vpack.c.bf16 %v850_v35, %v848_v61 }
 0x23a   : > { %3506 = vmatmul.msk.bf16.gmra.mxu2 %vm902_vm1, %v873_v39  ;;  %3519 = vmatmul.msk.bf16.gmra.mxu3 %vm902_vm1, %v1086_v63  ;;  %v3172_v39 = vld [vmem:[%s5766_s9 + $0x8] sm:$0xff] }
 0x23b   : > { %3183 = vperm.xlu1 %4303, %v3172_v39   ;;  %v1296_v39 = vpop.permute.xlu0 %1295 }
 0x23f   : > { %v853_v37 = vpop.f32.mrf.mxu0 }
 0x243   : > { %3198 = vperm.xlu1 %4303, %v3175_v7   ;;  %v1286_v7 = vpop.permute.xlu1 %1285 }
 0x247   : > { %v855_v4 = vpop.f32.mrf.mxu0 }
 0x248   : > { %v1087_v5 = vpack.c.bf16 %v855_v4, %v853_v37 }
 0x24a   : > { %3507 = vmatmul.msk.bf16.gmra.mxu2 %vm902_vm1, %v874_v43  ;;  %3520 = vmatmul.msk.bf16.gmra.mxu3 %vm902_vm1, %v1087_v5  ;;  %v4774_v43 = vpop.f32.mrf.mxu1  ;;  %v1276_v5 = vpop.permute.xlu2 %1275 }
 0x24b   : > { %v1291_v11 = vpop.permute.xlu1 %1290 }
 0x24f   : > { %v858_v9 = vpop.f32.mrf.mxu0 }
 0x252   : > { %v948_v14 = vpop.f32.mrf.mxu1 }
 0x257   : > { %v860_v42 = vpop.f32.mrf.mxu0 }
 0x258   : > { %v1088_v10 = vpack.c.bf16 %v860_v42, %v858_v9  ;;  %v1281_v42 = vpop.permute.xlu2 %1280 }
 0x25a   : > { %3508 = vmatmul.msk.bf16.gmra.mxu2 %vm902_vm1, %v875_v52  ;;  %3521 = vmatmul.msk.bf16.gmra.mxu3 %vm902_vm1, %v1088_v10  ;;  %v4796_v52 = vpop.f32.mrf.mxu1 }
 0x25d   : > { %v4784_v12 = vpop.f32.mrf.mxu2 }
 0x25f   : > { %v863_v13 = vpop.f32.mrf.mxu0 }
 0x262   : > { %v953_v44 = vpop.f32.mrf.mxu1 }
 0x265   : > { %v4789_v16 = vpop.f32.mrf.mxu2 }
 0x267   : > { %v865_v47 = vpop.f32.mrf.mxu0 }
 0x268   : > { %v1089_v51 = vpack.c.bf16 %v865_v47, %v863_v13  ;;  %v1256_v47 = vpop.permute.xlu2 %1255 }
 0x26a   : > { %3509 = vmatmul.msk.bf16.gmra.mxu2 %vm902_vm1, %v876_v56  ;;  %3522 = vmatmul.msk.bf16.gmra.mxu3 %vm902_vm1, %v1089_v51  ;;  %v4804_v54 = vpop.f32.mrf.mxu1 }
 0x26d   : > { %v1036_v20 = vpop.f32.mrf.mxu2  ;;  %v1142_v24 = vpop.f32.mrf.mxu3 }
 0x26e   : > { %v1037_v28 = vadd.f32 %v1036_v20, %v943_v8  ;;  %v1301_v8 = vpop.permute.xlu0 %1300 }
 0x270   : > { %v4798_v32 = vadd.f32 %v1142_v24, %v1037_v28  ;;  %v1271_v24 = vpop.permute.xlu1 %1270 }
 0x272   : > { %5770 = vst [vmem:[#allocation13_spill] sm:$0xff] %v4798_v32  ;;  %v958_v18 = vpop.f32.mrf.mxu1 }
 0x275   : > { %v4800_v36 = vpop.f32.mrf.mxu2  ;;  %v4802_v40 = vpop.f32.mrf.mxu3 }
 0x276   : > { %5771 = vst [vmem:[#allocation14_spill] sm:$0xff] %v4802_v40  ;;  %v1266_v15 = vpop.permute.xlu0 %1265 }
 0x27a   : > { %v4814_v23 = vpop.f32.mrf.mxu1 }
 0x27d   : > { %v1041_v45 = vpop.f32.mrf.mxu2  ;;  %v1147_v46 = vpop.f32.mrf.mxu3 }
 0x27e   : > { %v1042_v48 = vadd.f32 %v1041_v45, %v948_v14 }
 0x280   : > { %v4806_v55 = vadd.f32 %v1147_v46, %v1042_v48 }
 0x282   : > { %5772 = vst [vmem:[#allocation15_spill] sm:$0xff] %v4806_v55  ;;  %v963_v53 = vpop.f32.mrf.mxu1 }
 0x285   : > { %v4808_v56 = vpop.f32.mrf.mxu2  ;;  %v4810_v17 = vpop.f32.mrf.mxu3 }
 0x28a   : > { %v965_v31 = vpop.f32.mrf.mxu1 }
 0x28d   : > { %v1046_v19 = vpop.f32.mrf.mxu2  ;;  %v1152_v49 = vpop.f32.mrf.mxu3 }
 0x28e   : > { %v1047_v21 = vadd.f32 %v1046_v19, %v953_v44 }
 0x290   : > { %v4812_v22 = vadd.f32 %v1152_v49, %v1047_v21 }
 0x292   : > { %v968_v33 = vpop.f32.mrf.mxu1 }
 0x295   : > { %v4816_v50 = vpop.f32.mrf.mxu2  ;;  %v4818_v25 = vpop.f32.mrf.mxu3 }
 0x29a   : > { %v970_v63 = vpop.f32.mrf.mxu1 }
 0x29d   : > { %v1051_v26 = vpop.f32.mrf.mxu2  ;;  %v1157_v27 = vpop.f32.mrf.mxu3 }
 0x29e   : > { %v1052_v57 = vadd.f32 %v1051_v26, %v958_v18  ;;  %v1261_v26 = vpop.permute.xlu0 %1260 }
 0x2a0   : > { %v4820_v58 = vadd.f32 %v1157_v27, %v1052_v57 }
 0x2a2   : > { %v973_v38 = vpop.f32.mrf.mxu1 }
 0x2a5   : > { %v1053_v29 = vpop.f32.mrf.mxu2  ;;  %v4822_v30 = vpop.f32.mrf.mxu3 }
 0x2aa   : > { %v975_v6 = vpop.f32.mrf.mxu1 }
 0x2ad   : > { %v1056_v59 = vpop.f32.mrf.mxu2  ;;  %v1162_v60 = vpop.f32.mrf.mxu3 }
 0x2ae   : > { %v1057_v61 = vadd.f32 %v1056_v59, %v963_v53 }
 0x2b0   : > { %v4824_v62 = vadd.f32 %v1162_v60, %v1057_v61  ;;  %v1251_v60 = vpop.permute.xlu2 %1250 }
 0x2b2   : > { %v978_v10 = vpop.f32.mrf.mxu1 }
 0x2b5   : > { %v1058_v34 = vpop.f32.mrf.mxu2  ;;  %v1164_v35 = vpop.f32.mrf.mxu3 }
 0x2b6   : > { %v1059_v61 = vadd.f32 %v1058_v34, %v965_v31  ;;  %v1049_v31 = vadd.f32 %v4816_v50, %v4804_v54 }
 0x2ba   : > { %v980_v20 = vpop.f32.mrf.mxu1 }
 0x2bd   : > { %v1061_v0 = vpop.f32.mrf.mxu2  ;;  %v1167_v1 = vpop.f32.mrf.mxu3 }
 0x2be   : > { %v1062_v27 = vadd.f32 %v1061_v0, %v968_v33 }
 0x2c5   : > { %v1063_v2 = vpop.f32.mrf.mxu2  ;;  %v1169_v37 = vpop.f32.mrf.mxu3 }
 0x2c6   : > { %v1064_v19 = vadd.f32 %v1063_v2, %v970_v63  ;;  %v1054_v63 = vadd.f32 %v1053_v29, %v4814_v23  ;;  %v1196_v2 = vadd.f32 %v1164_v35, %v1059_v61  ;;  %v1319_v35 = vadd.f32 %v1256_v47, %v4820_v58  ;;  %v4126_v61 = vld [vmem:[%s5761_s4 + $0x24] sm:$0xf] }
 0x2c8   : > { %v1198_v32 = vadd.f32 %v1169_v37, %v1064_v19  ;;  %v1194_v34 = vadd.f32 %v4822_v30, %v1054_v63  ;;  %v4123_v19 = vld [vmem:[%s5761_s4 + $0x4] sm:$0xf0]  ;;  %v4128_v63 = vld [vmem:[%s5761_s4 + $0x34] sm:$0xf] }
 0x2ca   : > { %v1320_v50 = vadd.f32 %v1261_v26, %v1194_v34  ;;  %v4124_v26 = vld [vmem:[%s5761_s4 + $0x14] sm:$0xf] }
 0x2cd   : > { %v1066_v3 = vpop.f32.mrf.mxu2  ;;  %v1172_v4 = vpop.f32.mrf.mxu3 }
 0x2ce   : > { %v1067_v46 = vadd.f32 %v1066_v3, %v973_v38  ;;  %v1246_v38 = vpop.permute.xlu1 %1245 }
 0x2cf   : > { %v1317_v47 = vadd.f32 %v1246_v38, %v4812_v22  ;;  %v3525_v22 = vld [vmem:[%s5761_s4] sm:$0xf] }
 0x2d0   : > { %v1199_v53 = vadd.f32 %v1172_v4, %v1067_v46 }
 0x2d2   : > { %v1325_v40 = vadd.f32 %v1286_v7, %v1199_v53  ;;  %v1321_v7 = vadd.f32 %v1266_v15, %v4824_v62 }
 0x2d5   : > { %v1068_v9 = vpop.f32.mrf.mxu2  ;;  %v1174_v41 = vpop.f32.mrf.mxu3 }
 0x2d6   : > { %v1069_v28 = vadd.f32 %v1068_v9, %v975_v6  ;;  %v1197_v9 = vadd.f32 %v1167_v1, %v1062_v27  ;;  %v1322_v1 = vadd.f32 %v1271_v24, %v1196_v2  ;;  %v1311_v30 = vpop.permute.xlu1 %1310  ;;  %v3535_v27 = vld [vmem:[%s5761_s4 + $0x18] sm:$0xf0] }
 0x2d7   : > { %v3538_v53 = vor.u32 %v4124_v26, %v3535_v27  ;;  %v3551_v2 = vld [vmem:[%s5761_s4 + $0x38] sm:$0xf0]  ;;  %v3607_v26 = vld [vmem:[%s5761_s4 + $0xa8] sm:$0xf0] }
 0x2d8   : > { %v1200_v49 = vadd.f32 %v1174_v41, %v1069_v28  ;;  %v1324_v41 = vadd.f32 %v1281_v42, %v1198_v32  ;;  %v1323_v33 = vadd.f32 %v1276_v5, %v1197_v9  ;;  %v1236_v32 = vpop.permute.xlu2 %1235  ;;  %v1335_v54 = vpack.c.bf16 %v1322_v1, %v1321_v7  ;;  %v4127_v9 = vld [vmem:[%s5761_s4 + $0x24] sm:$0xf0]  ;;  %v4132_v7 = vld [vmem:[%s5761_s4 + $0x54] sm:$0xf] }
 0x2d9   : > { %v4131_v1 = vld [vmem:[%s5761_s4 + $0x44] sm:$0xf0] }
 0x2da   : > { %v1336_v37 = vpack.c.bf16 %v1324_v41, %v1323_v33  ;;  %v3549_v41 = vld [vmem:[%s5761_s4 + $0x30] sm:$0xf]  ;;  %v4129_v33 = vld [vmem:[%s5761_s4 + $0x34] sm:$0xf0] }
 0x2dd   : > { %v1071_v13 = vpop.f32.mrf.mxu2  ;;  %v1177_v14 = vpop.f32.mrf.mxu3 }
 0x2de   : > { %v1072_v51 = vadd.f32 %v1071_v13, %v978_v10  ;;  %v1326_v13 = vadd.f32 %v1291_v11, %v1200_v49  ;;  %v1334_v11 = vpack.c.bf16 %v1320_v50, %v1319_v35  ;;  %v3573_v50 = vld [vmem:[%s5761_s4 + $0x60] sm:$0xf] }
 0x2e0   : > { %v1201_v48 = vadd.f32 %v1177_v14, %v1072_v51  ;;  %v1337_v3 = vpack.c.bf16 %v1326_v13, %v1325_v40  ;;  %v5773_v51 = vld [vmem:[#allocation14_spill] sm:$0xff] }
 0x2e2   : > { %v1327_v57 = vadd.f32 %v1296_v39, %v1201_v48  ;;  %v1306_v39 = vpop.permute.xlu0 %1305  ;;  %v5775_v48 = vld [vmem:[#allocation13_spill] sm:$0xff] }
 0x2e5   : > { %v1073_v44 = vpop.f32.mrf.mxu2  ;;  %v1179_v45 = vpop.f32.mrf.mxu3 }
 0x2e6   : > { %v1074_v18 = vadd.f32 %v1073_v44, %v980_v20  ;;  %v1231_v44 = vpop.permute.xlu2 %1230 }
 0x2e8   : > { %v1202_v21 = vadd.f32 %v1179_v45, %v1074_v18 }
 0x2ea   : > { %v1328_v59 = vadd.f32 %v1301_v8, %v1202_v21  ;;  %v1241_v58 = vpop.permute.xlu0 %1240  ;;  %v3526_v21 = vor.u32 %v4123_v19, %v3525_v22  ;;  %v4141_v22 = vld [vmem:[%s5761_s4 + $0x94] sm:$0xf0] }
 0x2ec   : > { %v1338_v10 = vpack.c.bf16 %v1328_v59, %v1327_v57  ;;  %v3533_v57 = vld [vmem:[%s5761_s4 + $0x10] sm:$0xf]  ;;  %v4125_v59 = vld [vmem:[%s5761_s4 + $0x14] sm:$0xf0] }
 0x2ed   : > { %v1076_v55 = vpop.f32.mrf.mxu2  ;;  %v1182_v6 = vpop.f32.mrf.mxu3 }
 0x2ee   : > { %1719 = vmatpush.bf16.msrb.mxu1 %v1338_v10  ;;  %v1077_v0 = vadd.f32 %v1076_v55, %v4784_v12  ;;  %v1044_v12 = vadd.f32 %v4808_v56, %v4796_v52  ;;  %v1192_v55 = vadd.f32 %v4818_v25, %v1049_v31  ;;  %v3527_v52 = vld [vmem:[%s5761_s4 + $0x8] sm:$0xf0]  ;;  %v1039_v56 = vadd.f32 %v4800_v36, %v4774_v43 }
 0x2ef   : > { %v5774_v43 = vld [vmem:[#allocation15_spill] sm:$0xff] }
 0x2f0   : > { %v1203_v8 = vadd.f32 %v1182_v6, %v1077_v0  ;;  %v1190_v25 = vadd.f32 %v4810_v17, %v1044_v12  ;;  %v1318_v14 = vadd.f32 %v1251_v60, %v1192_v55  ;;  %v1188_v20 = vadd.f32 %v5773_v51, %v1039_v56  ;;  %v1226_v17 = vpop.permute.xlu1 %1225  ;;  %v3543_v10 = vld [vmem:[%s5761_s4 + $0x28] sm:$0xf0]  ;;  %v3541_v6 = vld [vmem:[%s5761_s4 + $0x20] sm:$0xf]  ;;  %v4133_v12 = vld [vmem:[%s5761_s4 + $0x54] sm:$0xf0] }
 0x2f1   : > { %v1315_v36 = vadd.f32 %v1236_v32, %v5774_v43  ;;  %v1313_v18 = vadd.f32 %v1226_v17, %v5775_v48  ;;  %v3534_v60 = vor.u32 %v4125_v59, %v3533_v57  ;;  %v3546_v13 = vor.u32 %v4126_v61, %v3543_v10  ;;  %v3559_v31 = vld [vmem:[%s5761_s4 + $0x48] sm:$0xf0]  ;;  %v3565_v32 = vld [vmem:[%s5761_s4 + $0x50] sm:$0xf]  ;;  %v4134_v55 = vld [vmem:[%s5761_s4 + $0x64] sm:$0xf] }
 0x2f2   : > { %1720 = vmatpush.bf16.msrb.mxu1 %v1337_v3  ;;  %v1329_v5 = vadd.f32 %v1306_v39, %v1203_v8  ;;  %v1316_v24 = vadd.f32 %v1241_v58, %v1190_v25  ;;  %v1333_v28 = vpack.c.bf16 %v1318_v14, %v1317_v47  ;;  %v1314_v45 = vadd.f32 %v1231_v44, %v1188_v20  ;;  %v4130_v39 = vld [vmem:[%s5761_s4 + $0x44] sm:$0xf]  ;;  %v3567_v8 = vld [vmem:[%s5761_s4 + $0x58] sm:$0xf0]  ;;  %v4137_v56 = vld [vmem:[%s5761_s4 + $0x74] sm:$0xf0] }
 0x2f3   : > { %v3542_v38 = vor.u32 %v4127_v9, %v3541_v6  ;;  %v3554_v3 = vor.u32 %v4128_v63, %v3551_v2  ;;  %v3550_v0 = vor.u32 %v4129_v33, %v3549_v41  ;;  %v3562_v34 = vor.u32 %v4130_v39, %v3559_v31  ;;  %v4139_v47 = vld [vmem:[%s5761_s4 + $0x84] sm:$0xf0]  ;;  %v4144_v63 = vld [vmem:[%s5761_s4 + $0xb4] sm:$0xf]  ;;  %v3615_v2 = vld [vmem:[%s5761_s4 + $0xb8] sm:$0xf0] }
 0x2f4   : > { %v1332_v46 = vpack.c.bf16 %v1316_v24, %v1315_v36  ;;  %v1331_v49 = vpack.c.bf16 %v1314_v45, %v1313_v18  ;;  %v4140_v24 = vld [vmem:[%s5761_s4 + $0x94] sm:$0xf]  ;;  %v3597_v18 = vld [vmem:[%s5761_s4 + $0x90] sm:$0xf]  ;;  %v4143_v6 = vld [vmem:[%s5761_s4 + $0xa4] sm:$0xf0]  ;;  %v3618_v33 = vor.u32 %v4144_v63, %v3615_v2 }
 0x2f5   : > { %v1078_v4 = vpop.f32.mrf.mxu2  ;;  %v1184_v40 = vpop.f32.mrf.mxu3  ;;  %v3598_v19 = vor.u32 %v4141_v22, %v3597_v18  ;;  %v2039_v63 = vld [vmem:[#allocation7 + $0x34] sm:$0x1] }
 0x2f6   : > { %v1079_v23 = vadd.f32 %v1078_v4, %v4789_v16  ;;  %1721 = vmatpush.bf16.msrb.mxu1 %v1336_v37  ;;  %v4122_v16 = vld [vmem:[%s5761_s4 + $0x4] sm:$0xf]  ;;  %v3557_v37 = vld [vmem:[%s5761_s4 + $0x40] sm:$0xf]  ;;  %v2053_v2 = vunpack.c.l.b16 %v2039_v63 }
 0x2f7   : > { %v3530_v15 = vor.u32 %v4122_v16, %v3527_v52  ;;  %v3558_v4 = vor.u32 %v4131_v1, %v3557_v37  ;;  %v3581_v52 = vld [vmem:[%s5761_s4 + $0x70] sm:$0xf]  ;;  %v4145_v1 = vld [vmem:[%s5761_s4 + $0xb4] sm:$0xf0] }
 0x2f8   : > { %v1204_v29 = vadd.f32 %v1184_v40, %v1079_v23  ;;  %v3570_v23 = vor.u32 %v4132_v7, %v3567_v8  ;;  %v3566_v40 = vor.u32 %v4133_v12, %v3565_v32  ;;  %v3582_v25 = vor.u32 %v4137_v56, %v3581_v52  ;;  %v3613_v37 = vld [vmem:[%s5761_s4 + $0xb0] sm:$0xf]  ;;  %v4146_v8 = vld [vmem:[%s5761_s4 + $0xc4] sm:$0xf]  ;;  %v3631_v52 = vld [vmem:[%s5761_s4 + $0xd8] sm:$0xf0] }
 0x2fa   : > { %v1330_v42 = vadd.f32 %v1311_v30, %v1204_v29  ;;  %1722 = vmatpush.bf16.msrb.mxu1 %v1335_v54  ;;  %v3575_v29 = vld [vmem:[%s5761_s4 + $0x68] sm:$0xf0]  ;;  %v4135_v30 = vld [vmem:[%s5761_s4 + $0x64] sm:$0xf0] }
 0x2fb   : > { %v3578_v54 = vor.u32 %v4134_v55, %v3575_v29  ;;  %v3574_v35 = vor.u32 %v4135_v30, %v3573_v50  ;;  %v3621_v30 = vld [vmem:[%s5761_s4 + $0xc0] sm:$0xf] }
 0x2fc   : > { %v1339_v62 = vpack.c.bf16 %v1330_v42, %v1329_v5  ;;  %v4136_v5 = vld [vmem:[%s5761_s4 + $0x74] sm:$0xf]  ;;  %v3583_v42 = vld [vmem:[%s5761_s4 + $0x78] sm:$0xf0] }
 0x2fd   : > { %v3586_v16 = vor.u32 %v4136_v5, %v3583_v42 }
 0x2fe   : > { %1723 = vmatpush.bf16.msrb.mxu1 %v1334_v11  ;;  %1870 = vmatpush.bf16.msra.mxu2 %v1339_v62  ;;  %v4138_v62 = vld [vmem:[%s5761_s4 + $0x84] sm:$0xf]  ;;  %v3591_v11 = vld [vmem:[%s5761_s4 + $0x88] sm:$0xf0] }
 0x2ff   : > { %v3594_v14 = vor.u32 %v4138_v62, %v3591_v11 }
 0x301   : > { %3739 = vmatmul.msk.bf16.vlgmr.msra.gmra.mxu2 %vm1637_vm2, %v3530_v15  ;;  %v3589_v15 = vld [vmem:[%s5761_s4 + $0x80] sm:$0xf] }
 0x302   : > { %1724 = vmatpush.bf16.msrb.mxu1 %v1333_v28  ;;  %v3590_v51 = vor.u32 %v4139_v47, %v3589_v15  ;;  %v3599_v28 = vld [vmem:[%s5761_s4 + $0x98] sm:$0xf0]  ;;  %v3629_v47 = vld [vmem:[%s5761_s4 + $0xd0] sm:$0xf] }
 0x303   : > { %v3602_v36 = vor.u32 %v4140_v24, %v3599_v28  ;;  %v4150_v28 = vld [vmem:[%s5761_s4 + $0xe4] sm:$0xf] }
 0x306   : > { %1725 = vmatpush.bf16.msrb.mxu1 %v1332_v46 }
 0x30a   : > { %1726 = vmatpush.bf16.msrb.mxu1 %v1331_v49 }
 0x30d   : > { %1727 = vmatmul.bf16.vlgmr.msrb.gmra.mxu1 %v3526_v21  ;;  %v4142_v21 = vld [vmem:[%s5761_s4 + $0xa4] sm:$0xf] }
 0x30e   : > { %v3610_v57 = vor.u32 %v4142_v21, %v3607_v26  ;;  %v3637_v21 = vld [vmem:[%s5761_s4 + $0xe0] sm:$0xf]  ;;  %v4151_v26 = vld [vmem:[%s5761_s4 + $0xe4] sm:$0xf0] }
 0x311   : > { %3740 = vmatmul.msk.bf16.gmra.mxu2 %vm1637_vm2, %v3538_v53 }
 0x31d   : > { %1732 = vmatmul.bf16.gmra.mxu1 %v3534_v60 }
 0x321   : > { %3741 = vmatmul.msk.bf16.gmra.mxu2 %vm1637_vm2, %v3546_v13  ;;  %v3605_v13 = vld [vmem:[%s5761_s4 + $0xa0] sm:$0xf] }
 0x322   : > { %v3606_v9 = vor.u32 %v4143_v6, %v3605_v13 }
 0x32d   : > { %1737 = vmatmul.bf16.gmra.mxu1 %v3542_v38 }
 0x331   : > { %3742 = vmatmul.msk.bf16.gmra.mxu2 %vm1637_vm2, %v3554_v3 }
 0x33d   : > { %1742 = vmatmul.bf16.gmra.mxu1 %v3550_v0 }
 0x341   : > { %3743 = vmatmul.msk.bf16.gmra.mxu2 %vm1637_vm2, %v3562_v34 }
 0x34d   : > { %1747 = vmatmul.bf16.gmra.mxu1 %v3558_v4  ;;  %v3614_v4 = vor.u32 %v4145_v1, %v3613_v37 }
 0x351   : > { %3744 = vmatmul.msk.bf16.gmra.mxu2 %vm1637_vm2, %v3570_v23  ;;  %v3623_v23 = vld [vmem:[%s5761_s4 + $0xc8] sm:$0xf0] }
 0x35d   : > { %1752 = vmatmul.bf16.gmra.mxu1 %v3566_v40  ;;  %v3626_v40 = vor.u32 %v4146_v8, %v3623_v23  ;;  %v3655_v8 = vld [vmem:[%s5761_s4 + $0x108] sm:$0xf0]  ;;  %v4181_v23 = vld [vmem:[#allocation7 + $0x2c] sm:$0xff] }
 0x361   : > { %3745 = vmatmul.msk.bf16.gmra.mxu2 %vm1637_vm2, %v3578_v54 }
 0x36d   : > { %1757 = vmatmul.bf16.gmra.mxu1 %v3574_v35  ;;  %v4147_v35 = vld [vmem:[%s5761_s4 + $0xc4] sm:$0xf0] }
 0x36e   : > { %v3622_v5 = vor.u32 %v4147_v35, %v3621_v30  ;;  %v4179_v35 = vld [vmem:[#allocation7 + $0x1c] sm:$0xff] }
 0x371   : > { %3746 = vmatmul.msk.bf16.gmra.mxu2 %vm1637_vm2, %v3586_v16  ;;  %v4148_v16 = vld [vmem:[%s5761_s4 + $0xd4] sm:$0xf] }
 0x372   : > { %v3634_v62 = vor.u32 %v4148_v16, %v3631_v52  ;;  %v4155_v16 = vld [vmem:[%s5761_s4 + $0x104] sm:$0xf0] }
 0x37d   : > { %1762 = vmatmul.bf16.gmra.mxu1 %v3582_v25 }
 0x381   : > { %3747 = vmatmul.msk.bf16.gmra.mxu2 %vm1637_vm2, %v3594_v14 }
 0x384   : > { %v1872_v58 = vpop.f32.mrf.mxu2 }
 0x38a   : > { %v1728_v20 = vpop.f32.mrf.mxu1 }
 0x38b   : > { %v4967_v44 = vadd.f32 %v1872_v58, %v1728_v20 }
 0x38c   : > { %v1874_v43 = vpop.f32.mrf.mxu2 }
 0x38d   : > { %1767 = vmatmul.bf16.gmra.mxu1 %v3590_v51  ;;  %v4149_v51 = vld [vmem:[%s5761_s4 + $0xd4] sm:$0xf0] }
 0x38e   : > { %v3630_v20 = vor.u32 %v4149_v51, %v3629_v47 }
 0x391   : > { %3748 = vmatmul.msk.bf16.gmra.mxu2 %vm1637_vm2, %v3602_v36 }
 0x392   : > { %v1730_v17 = vpop.f32.mrf.mxu1 }
 0x393   : > { %v4970_v45 = vadd.f32 %v1874_v43, %v1730_v17  ;;  %v3639_v43 = vld [vmem:[%s5761_s4 + $0xe8] sm:$0xf0] }
 0x394   : > { %v1877_v46 = vpop.f32.mrf.mxu2 }
 0x395   : > { %v2007_v48 = vpack.c.bf16 %v4970_v45, %v4967_v44  ;;  %v3693_v44 = vld [vmem:[%s5761_s4 + $0x150] sm:$0xf]  ;;  %v4165_v45 = vld [vmem:[%s5761_s4 + $0x154] sm:$0xf0] }
 0x39a   : > { %v1733_v49 = vpop.f32.mrf.mxu1 }
 0x39b   : > { %v4986_v27 = vadd.f32 %v1877_v46, %v1733_v49  ;;  %v3642_v46 = vor.u32 %v4150_v28, %v3639_v43  ;;  %v3661_v28 = vld [vmem:[%s5761_s4 + $0x110] sm:$0xf]  ;;  %v4157_v43 = vld [vmem:[%s5761_s4 + $0x114] sm:$0xf0] }
 0x39c   : > { %v1879_v53 = vpop.f32.mrf.mxu2 }
 0x39d   : > { %1772 = vmatmul.bf16.gmra.mxu1 %v3598_v19 }
 0x3a1   : > { %3749 = vmatmul.msk.bf16.gmra.mxu2 %vm1637_vm2, %v3610_v57 }
 0x3a2   : > { %v1735_v59 = vpop.f32.mrf.mxu1 }
 0x3a3   : > { %v4989_v60 = vadd.f32 %v1879_v53, %v1735_v59  ;;  %v3638_v53 = vor.u32 %v4151_v26, %v3637_v21  ;;  %v4152_v59 = vld [vmem:[%s5761_s4 + $0xf4] sm:$0xf] }
 0x3a4   : > { %v1882_v61 = vpop.f32.mrf.mxu2 }
 0x3a5   : > { %v2008_v10 = vpack.c.bf16 %v4989_v60, %v4986_v27  ;;  %v3701_v27 = vld [vmem:[%s5761_s4 + $0x160] sm:$0xf]  ;;  %v4167_v60 = vld [vmem:[%s5761_s4 + $0x164] sm:$0xf0] }
 0x3aa   : > { %v1738_v38 = vpop.f32.mrf.mxu1 }
 0x3ab   : > { %v5005_v3 = vadd.f32 %v1882_v61, %v1738_v38  ;;  %v3647_v61 = vld [vmem:[%s5761_s4 + $0xf8] sm:$0xf0] }
 0x3ac   : > { %v1884_v41 = vpop.f32.mrf.mxu2 }
 0x3ad   : > { %1777 = vmatmul.bf16.gmra.mxu1 %v3606_v9  ;;  %v3650_v9 = vor.u32 %v4152_v59, %v3647_v61 }
 0x3b1   : > { %3750 = vmatmul.msk.bf16.gmra.mxu2 %vm1637_vm2, %v3618_v33  ;;  %v2057_v33 = vpack.c.b16 %v2053_v2, %v2053_v2 }
 0x3b2   : > { %v1740_v0 = vpop.f32.mrf.mxu1 }
 0x3b3   : > { %v5008_v39 = vadd.f32 %v1884_v41, %v1740_v0  ;;  %v3645_v0 = vld [vmem:[%s5761_s4 + $0xf0] sm:$0xf]  ;;  %v2091_v37 = vsel %vm2089_vm3, %v2057_v33, 0 }
 0x3b4   : > { %v1887_v31 = vpop.f32.mrf.mxu2  ;;  %2097 = vmatpush.bf16.msrb.mxu3 %v2091_v37 }
 0x3b5   : > { %v2009_v34 = vpack.c.bf16 %v5008_v39, %v5005_v3  ;;  %v3709_v3 = vld [vmem:[%s5761_s4 + $0x170] sm:$0xf]  ;;  %v4169_v39 = vld [vmem:[%s5761_s4 + $0x174] sm:$0xf0] }
 0x3b8   : > { %2098 = vmatpush.bf16.msrb.mxu3 %v4181_v23 }
 0x3ba   : > { %v1743_v7 = vpop.f32.mrf.mxu1 }
 0x3bb   : > { %v5024_v32 = vadd.f32 %v1887_v31, %v1743_v7  ;;  %v4153_v31 = vld [vmem:[%s5761_s4 + $0xf4] sm:$0xf0]  ;;  %v4154_v7 = vld [vmem:[%s5761_s4 + $0x104] sm:$0xf] }
 0x3bc   : > { %v1889_v12 = vpop.f32.mrf.mxu2  ;;  %v3646_v1 = vor.u32 %v4153_v31, %v3645_v0 }
 0x3bd   : > { %1782 = vmatmul.bf16.gmra.mxu1 %v3614_v4 }
 0x3c1   : > { %3751 = vmatmul.msk.bf16.gmra.mxu2 %vm1637_vm2, %v3626_v40 }
 0x3c2   : > { %v1745_v55 = vpop.f32.mrf.mxu1 }
 0x3c3   : > { %v5027_v29 = vadd.f32 %v1889_v12, %v1745_v55  ;;  %v3658_v55 = vor.u32 %v4154_v7, %v3655_v8 }
 0x3c4   : > { %v1892_v54 = vpop.f32.mrf.mxu2 }
 0x3c5   : > { %v2010_v50 = vpack.c.bf16 %v5027_v29, %v5024_v32  ;;  %v3717_v32 = vld [vmem:[%s5761_s4 + $0x180] sm:$0xf]  ;;  %v4171_v29 = vld [vmem:[%s5761_s4 + $0x184] sm:$0xf0] }
 0x3ca   : > { %v1748_v42 = vpop.f32.mrf.mxu1 }
 0x3cb   : > { %v5043_v56 = vadd.f32 %v1892_v54, %v1748_v42  ;;  %v4180_v54 = vld [vmem:[#allocation7 + $0x24] sm:$0xff]  ;;  %v3653_v42 = vld [vmem:[%s5761_s4 + $0x100] sm:$0xf] }
 0x3cc   : > { %v1894_v25 = vpop.f32.mrf.mxu2  ;;  %2099 = vmatpush.bf16.msrb.mxu3 %v4180_v54  ;;  %v3654_v52 = vor.u32 %v4155_v16, %v3653_v42 }
 0x3cd   : > { %1787 = vmatmul.bf16.gmra.mxu1 %v3622_v5 }
 0x3d0   : > { %2100 = vmatpush.bf16.msrb.mxu3 %v4179_v35 }
 0x3d1   : > { %3752 = vmatmul.msk.bf16.gmra.mxu2 %vm1637_vm2, %v3634_v62  ;;  %v4156_v62 = vld [vmem:[%s5761_s4 + $0x114] sm:$0xf] }
 0x3d2   : > { %v1750_v11 = vpop.f32.mrf.mxu1 }
 0x3d3   : > { %v5046_v14 = vadd.f32 %v1894_v25, %v1750_v11  ;;  %v3663_v11 = vld [vmem:[%s5761_s4 + $0x118] sm:$0xf0] }
 0x3d4   : > { %v1897_v58 = vpop.f32.mrf.mxu2  ;;  %v3666_v51 = vor.u32 %v4156_v62, %v3663_v11 }
 0x3d5   : > { %v2011_v15 = vpack.c.bf16 %v5046_v14, %v5043_v56  ;;  %v3725_v56 = vld [vmem:[%s5761_s4 + $0x190] sm:$0xf]  ;;  %v4173_v14 = vld [vmem:[%s5761_s4 + $0x194] sm:$0xf0] }
 0x3da   : > { %v1753_v24 = vpop.f32.mrf.mxu1 }
 0x3db   : > { %v5062_v36 = vadd.f32 %v1897_v58, %v1753_v24 }
 0x3dc   : > { %v1899_v17 = vpop.f32.mrf.mxu2 }
 0x3dd   : > { %1792 = vmatmul.bf16.gmra.mxu1 %v3630_v20 }
 0x3e1   : > { %3753 = vmatmul.msk.bf16.gmra.mxu2 %vm1637_vm2, %v3642_v46 }
 0x3e2   : > { %v1755_v18 = vpop.f32.mrf.mxu1 }
 0x3e3   : > { %v5065_v22 = vadd.f32 %v1899_v17, %v1755_v18  ;;  %v3662_v17 = vor.u32 %v4157_v43, %v3661_v28 }
 0x3e4   : > { %v1902_v19 = vpop.f32.mrf.mxu2 }
 0x3e5   : > { %v2012_v49 = vpack.c.bf16 %v5065_v22, %v5062_v36  ;;  %v3733_v36 = vld [vmem:[%s5761_s4 + $0x1a0] sm:$0xf]  ;;  %v4175_v22 = vld [vmem:[%s5761_s4 + $0x1a4] sm:$0xf0] }
 0x3ea   : > { %v1758_v57 = vpop.f32.mrf.mxu1 }
 0x3eb   : > { %v5081_v13 = vadd.f32 %v1902_v19, %v1758_v57 }
 0x3ec   : > { %v5083_v6 = vpop.f32.mrf.mxu2 }
 0x3ed   : > { %1797 = vmatmul.bf16.gmra.mxu1 %v3638_v53 }
 0x3f1   : > { %3754 = vmatmul.msk.bf16.gmra.mxu2 %vm1637_vm2, %v3650_v9 }
 0x3f2   : > { %v5086_v38 = vpop.f32.mrf.mxu1 }
 0x3f4   : > { %v1907_v41 = vpop.f32.mrf.mxu2 }
 0x3fa   : > { %v1763_v4 = vpop.f32.mrf.mxu1 }
 0x3fb   : > { %v5101_v12 = vadd.f32 %v1907_v41, %v1763_v4 }
 0x3fc   : > { %v5103_v40 = vpop.f32.mrf.mxu2 }
 0x3fd   : > { %1802 = vmatmul.bf16.gmra.mxu1 %v3646_v1 }
 0x401   : > { %3755 = vmatmul.msk.bf16.gmra.mxu2 %vm1637_vm2, %v3658_v55 }
 0x402   : > { %v5106_v30 = vpop.f32.mrf.mxu1 }
 0x404   : > { %v1912_v5 = vpop.f32.mrf.mxu2 }
 0x40a   : > { %v1768_v25 = vpop.f32.mrf.mxu1 }
 0x40b   : > { %v5120_v58 = vadd.f32 %v1912_v5, %v1768_v25 }
 0x40c   : > { %v5122_v47 = vpop.f32.mrf.mxu2 }
 0x40d   : > { %1807 = vmatmul.bf16.gmra.mxu1 %v3654_v52 }
 0x411   : > { %3756 = vmatmul.msk.bf16.gmra.mxu2 %vm1637_vm2, %v3666_v51 }
 0x412   : > { %v5125_v20 = vpop.f32.mrf.mxu1 }
 0x414   : > { %v1917_v24 = vpop.f32.mrf.mxu2 }
 0x41a   : > { %v1773_v46 = vpop.f32.mrf.mxu1 }
 0x41b   : > { %v1918_v21 = vadd.f32 %v1917_v24, %v1773_v46 }
 0x41c   : > { %v1919_v18 = vpop.f32.mrf.mxu2 }
 0x41d   : > { %1812 = vmatmul.bf16.gmra.mxu1 %v3662_v17 }
 0x422   : > { %v1775_v19 = vpop.f32.mrf.mxu1 }
 0x423   : > { %v1920_v26 = vadd.f32 %v1919_v18, %v1775_v19 }
 0x424   : > { %v1922_v53 = vpop.f32.mrf.mxu2 }
 0x425   : > { %v2023_v57 = vpack.c.bf16 %v1920_v26, %v1918_v21 }
 0x427   : > { %3778 = vmatmul.msk.bf16.vlgmr.msrb.gmra.mxu3 %vm2061_vm4, %v2023_v57 }
 0x42a   : > { %v1778_v59 = vpop.f32.mrf.mxu1 }
 0x42b   : > { %v1923_v63 = vadd.f32 %v1922_v53, %v1778_v59 }
 0x42c   : > { %v1924_v61 = vpop.f32.mrf.mxu2 }
 0x432   : > { %v1780_v9 = vpop.f32.mrf.mxu1 }
 0x433   : > { %v1925_v2 = vadd.f32 %v1924_v61, %v1780_v9  ;;  %v2022_v61 = vld [vmem:[#allocation7 + $0x18] sm:$0x1] }
 0x434   : > { %v1927_v41 = vpop.f32.mrf.mxu2 }
 0x435   : > { %v2024_v33 = vpack.c.bf16 %v1925_v2, %v1923_v63  ;;  %v2160_v2 = vunpack.c.l.b16 %v2022_v61  ;;  %v4162_v61 = vld [vmem:[%s5761_s4 + $0x144] sm:$0xf] }
 0x437   : > { %3779 = vmatmul.msk.bf16.gmra.mxu3 %vm2061_vm4, %v2024_v33 }
 0x43a   : > { %v1783_v0 = vpop.f32.mrf.mxu1 }
 0x43b   : > { %v1928_v1 = vadd.f32 %v1927_v41, %v1783_v0  ;;  %v2164_v0 = vpack.c.b16 %v2160_v2, %v2160_v2 }
 0x43c   : > { %v1929_v31 = vpop.f32.mrf.mxu2 }
 0x442   : > { %v1785_v37 = vpop.f32.mrf.mxu1 }
 0x443   : > { %v1930_v4 = vadd.f32 %v1929_v31, %v1785_v37  ;;  %v2196_v31 = vsel %vm2089_vm3, %v2164_v0, 0 }
 0x444   : > { %v1932_v7 = vpop.f32.mrf.mxu2  ;;  %2202 = vmatpush.bf16.msra.mxu3 %v2196_v31 }
 0x445   : > { %v2025_v8 = vpack.c.bf16 %v1930_v4, %v1928_v1  ;;  %v4178_v1 = vld [vmem:[#allocation7 + $0x10] sm:$0xff]  ;;  %v4158_v4 = vld [vmem:[%s5761_s4 + $0x124] sm:$0xf] }
 0x447   : > { %3780 = vmatmul.msk.bf16.gmra.mxu3 %vm2061_vm4, %v2025_v8 }
 0x448   : > { %2203 = vmatpush.bf16.msra.mxu3 %v4178_v1  ;;  %v3695_v1 = vld [vmem:[%s5761_s4 + $0x158] sm:$0xf0] }
 0x44a   : > { %v1788_v23 = vpop.f32.mrf.mxu1 }
 0x44b   : > { %v1933_v35 = vadd.f32 %v1932_v7, %v1788_v23  ;;  %v3671_v7 = vld [vmem:[%s5761_s4 + $0x128] sm:$0xf0]  ;;  %v4177_v23 = vld [vmem:[#allocation7 + $0x8] sm:$0xff] }
 0x44c   : > { %v1934_v55 = vpop.f32.mrf.mxu2  ;;  %v3674_v8 = vor.u32 %v4158_v4, %v3671_v7  ;;  %2204 = vmatpush.bf16.msra.mxu3 %v4177_v23  ;;  %v4166_v23 = vld [vmem:[%s5761_s4 + $0x164] sm:$0xf] }
 0x44e   : > { %3757 = vmatmul.msk.bf16.gmra.mxu2 %vm1637_vm2, %v3674_v8 }
 0x452   : > { %v1790_v54 = vpop.f32.mrf.mxu1 }
 0x453   : > { %v1935_v5 = vadd.f32 %v1934_v55, %v1790_v54 }
 0x454   : > { %v1937_v42 = vpop.f32.mrf.mxu2 }
 0x455   : > { %v2026_v16 = vpack.c.bf16 %v1935_v5, %v1933_v35  ;;  %v4176_v35 = vld [vmem:[#allocation7] sm:$0xff]  ;;  %v3669_v5 = vld [vmem:[%s5761_s4 + $0x120] sm:$0xf] }
 0x456   : > { %2205 = vmatpush.bf16.msra.mxu3 %v4176_v35 }
 0x457   : > { %3781 = vmatmul.msk.bf16.gmra.mxu3 %vm2061_vm4, %v2026_v16 }
 0x45a   : > { %v1793_v52 = vpop.f32.mrf.mxu1 }
 0x45b   : > { %v1938_v11 = vadd.f32 %v1937_v42, %v1793_v52  ;;  %v4159_v42 = vld [vmem:[%s5761_s4 + $0x124] sm:$0xf0] }
 0x45c   : > { %v1939_v25 = vpop.f32.mrf.mxu2 }
 0x462   : > { %v1795_v62 = vpop.f32.mrf.mxu1 }
 0x463   : > { %v1940_v51 = vadd.f32 %v1939_v25, %v1795_v62  ;;  %v3670_v25 = vor.u32 %v4159_v42, %v3669_v5  ;;  %v4168_v42 = vld [vmem:[%s5761_s4 + $0x174] sm:$0xf] }
 0x464   : > { %v1942_v24 = vpop.f32.mrf.mxu2 }
 0x465   : > { %v2027_v28 = vpack.c.bf16 %v1940_v51, %v1938_v11  ;;  %1817 = vmatmul.bf16.gmra.mxu1 %v3670_v25 }
 0x467   : > { %3782 = vmatmul.msk.bf16.gmra.mxu3 %vm2061_vm4, %v2027_v28  ;;  %v3679_v28 = vld [vmem:[%s5761_s4 + $0x138] sm:$0xf0] }
 0x46a   : > { %v1798_v43 = vpop.f32.mrf.mxu1 }
 0x46b   : > { %v1943_v18 = vadd.f32 %v1942_v24, %v1798_v43  ;;  %v4160_v24 = vld [vmem:[%s5761_s4 + $0x134] sm:$0xf] }
 0x46c   : > { %v1944_v17 = vpop.f32.mrf.mxu2  ;;  %v3682_v43 = vor.u32 %v4160_v24, %v3679_v28 }
 0x46e   : > { %3758 = vmatmul.msk.bf16.gmra.mxu2 %vm1637_vm2, %v3682_v43 }
 0x472   : > { %v1800_v46 = vpop.f32.mrf.mxu1 }
 0x473   : > { %v1945_v19 = vadd.f32 %v1944_v17, %v1800_v46 }
 0x474   : > { %v1947_v21 = vpop.f32.mrf.mxu2 }
 0x475   : > { %v2028_v26 = vpack.c.bf16 %v1945_v19, %v1943_v18  ;;  %v3677_v18 = vld [vmem:[%s5761_s4 + $0x130] sm:$0xf]  ;;  %v4161_v19 = vld [vmem:[%s5761_s4 + $0x134] sm:$0xf0] }
 0x477   : > { %3783 = vmatmul.msk.bf16.gmra.mxu3 %vm2061_vm4, %v2028_v26 }
 0x47a   : > { %v1803_v53 = vpop.f32.mrf.mxu1 }
 0x47b   : > { %v1948_v9 = vadd.f32 %v1947_v21, %v1803_v53  ;;  %v3678_v53 = vor.u32 %v4161_v19, %v3677_v18 }
 0x47c   : > { %v1949_v57 = vpop.f32.mrf.mxu2 }
 0x47d   : > { %1822 = vmatmul.bf16.gmra.mxu1 %v3678_v53  ;;  %v3735_v53 = vld [vmem:[%s5761_s4 + $0x1a8] sm:$0xf0] }
 0x482   : > { %v1805_v59 = vpop.f32.mrf.mxu1 }
 0x483   : > { %v1950_v63 = vadd.f32 %v1949_v57, %v1805_v59 }
 0x484   : > { %v1952_v41 = vpop.f32.mrf.mxu2 }
 0x485   : > { %v2029_v33 = vpack.c.bf16 %v1950_v63, %v1948_v9  ;;  %v3687_v9 = vld [vmem:[%s5761_s4 + $0x148] sm:$0xf0] }
 0x486   : > { %v3690_v63 = vor.u32 %v4162_v61, %v3687_v9  ;;  %v1905_v61 = vadd.f32 %v5083_v6, %v5086_v38 }
 0x487   : > { %3784 = vmatmul.msk.bf16.gmra.mxu3 %vm2061_vm4, %v2029_v33  ;;  %v4163_v33 = vld [vmem:[%s5761_s4 + $0x144] sm:$0xf0] }
 0x488   : > { %3759 = vmatmul.msk.bf16.gmra.mxu2 %vm1637_vm2, %v3690_v63 }
 0x48a   : > { %v1808_v37 = vpop.f32.mrf.mxu1 }
 0x48b   : > { %v1953_v16 = vadd.f32 %v1952_v41, %v1808_v37  ;;  %v3685_v41 = vld [vmem:[%s5761_s4 + $0x140] sm:$0xf]  ;;  %v4164_v37 = vld [vmem:[%s5761_s4 + $0x154] sm:$0xf] }
 0x48c   : > { %v1954_v55 = vpop.f32.mrf.mxu2  ;;  %v3686_v0 = vor.u32 %v4163_v33, %v3685_v41  ;;  %v3698_v4 = vor.u32 %v4164_v37, %v3695_v1  ;;  %v3734_v41 = vor.u32 %v4175_v22, %v3733_v36  ;;  %v2013_v37 = vpack.c.bf16 %v1905_v61, %v5081_v13  ;;  %v4182_v13 = vld [vmem:[#allocation7 + $0x38] sm:$0xff] }
 0x48e   : > { %1827 = vmatmul.bf16.gmra.mxu1 %v3686_v0 }
 0x492   : > { %v1810_v54 = vpop.f32.mrf.mxu1 }
 0x493   : > { %v1955_v52 = vadd.f32 %v1954_v55, %v1810_v54  ;;  %v3703_v55 = vld [vmem:[%s5761_s4 + $0x168] sm:$0xf0] }
 0x494   : > { %v1957_v11 = vpop.f32.mrf.mxu2  ;;  %v3706_v54 = vor.u32 %v4166_v23, %v3703_v55  ;;  %v1910_v23 = vadd.f32 %v5103_v40, %v5106_v30 }
 0x495   : > { %v2030_v62 = vpack.c.bf16 %v1955_v52, %v1953_v16  ;;  %v3711_v16 = vld [vmem:[%s5761_s4 + $0x178] sm:$0xf0] }
 0x496   : > { %v3714_v52 = vor.u32 %v4168_v42, %v3711_v16  ;;  %v1915_v42 = vadd.f32 %v5122_v47, %v5125_v20 }
 0x497   : > { %3785 = vmatmul.msk.bf16.gmra.mxu3 %vm2061_vm4, %v2030_v62 }
 0x498   : > { %3760 = vmatmul.msk.bf16.gmra.mxu2 %vm1637_vm2, %v3698_v4  ;;  %v4184_v4 = vld [vmem:[#allocation7 + $0x48] sm:$0xff]  ;;  %v2015_v40 = vpack.c.bf16 %v1915_v42, %v5120_v58 }
 0x49a   : > { %v1813_v51 = vpop.f32.mrf.mxu1 }
 0x49b   : > { %v1958_v21 = vadd.f32 %v1957_v11, %v1813_v51  ;;  %v4170_v11 = vld [vmem:[%s5761_s4 + $0x184] sm:$0xf]  ;;  %v3719_v51 = vld [vmem:[%s5761_s4 + $0x188] sm:$0xf0] }
 0x49c   : > { %v1959_v17 = vpop.f32.mrf.mxu2  ;;  %v3722_v24 = vor.u32 %v4170_v11, %v3719_v51 }
 0x4a2   : > { %v1815_v46 = vpop.f32.mrf.mxu1 }
 0x4a3   : > { %v1960_v26 = vadd.f32 %v1959_v17, %v1815_v46  ;;  %v4172_v17 = vld [vmem:[%s5761_s4 + $0x194] sm:$0xf]  ;;  %v3727_v46 = vld [vmem:[%s5761_s4 + $0x198] sm:$0xf0] }
 0x4a4   : > { %v3730_v18 = vor.u32 %v4172_v17, %v3727_v46 }
 0x4a5   : > { %v2031_v57 = vpack.c.bf16 %v1960_v26, %v1958_v21  ;;  %v4174_v26 = vld [vmem:[%s5761_s4 + $0x1a4] sm:$0xf] }
 0x4a7   : > { %3786 = vmatmul.msk.bf16.gmra.mxu3 %vm2061_vm4, %v2031_v57  ;;  %v3738_v57 = vor.u32 %v4174_v26, %v3735_v53 }
 0x4a8   : > { %3761 = vmatmul.msk.bf16.gmra.mxu2 %vm1637_vm2, %v3706_v54  ;;  %v2014_v54 = vpack.c.bf16 %v1910_v23, %v5101_v12 }
 0x4aa   : > { %v5169_v59 = vpop.f32.mrf.mxu3 }
 0x4b2   : > { %v5178_v2 = vpop.f32.mrf.mxu3 }
 0x4b7   : > { %3799 = vmatmul.msk.bf16.vlgmr.msra.gmra.mxu3 %vm2061_vm4, %v2007_v48  ;;  %v3694_v48 = vor.u32 %v4165_v45, %v3693_v44  ;;  %v4183_v44 = vld [vmem:[#allocation7 + $0x40] sm:$0xff] }
 0x4b8   : > { %3762 = vmatmul.msk.bf16.gmra.mxu2 %vm1637_vm2, %v3714_v52 }
 0x4b9   : > { %1832 = vmatmul.bf16.gmra.mxu1 %v3694_v48 }
 0x4ba   : > { %v5190_v31 = vpop.f32.mrf.mxu3 }
 0x4c2   : > { %v5199_v7 = vpop.f32.mrf.mxu3 }
 0x4c7   : > { %3800 = vmatmul.msk.bf16.gmra.mxu3 %vm2061_vm4, %v2008_v10  ;;  %v3702_v10 = vor.u32 %v4167_v60, %v3701_v27 }
 0x4c8   : > { %3763 = vmatmul.msk.bf16.gmra.mxu2 %vm1637_vm2, %v3722_v24 }
 0x4c9   : > { %1837 = vmatmul.bf16.gmra.mxu1 %v3702_v10 }
 0x4ca   : > { %v5211_v8 = vpop.f32.mrf.mxu3 }
 0x4d1   : > { %v1962_v63 = vpop.f32.mrf.mxu2 }
 0x4d2   : > { %v5220_v35 = vpop.f32.mrf.mxu3 }
 0x4d7   : > { %3801 = vmatmul.msk.bf16.gmra.mxu3 %vm2061_vm4, %v2009_v34  ;;  %v3710_v34 = vor.u32 %v4169_v39, %v3709_v3 }
 0x4d8   : > { %3764 = vmatmul.msk.bf16.gmra.mxu2 %vm1637_vm2, %v3730_v18 }
 0x4d9   : > { %1842 = vmatmul.bf16.gmra.mxu1 %v3710_v34  ;;  %v1964_v45 = vpop.f32.mrf.mxu2 }
 0x4da   : > { %v5232_v5 = vpop.f32.mrf.mxu3 }
 0x4e2   : > { %v5241_v25 = vpop.f32.mrf.mxu3  ;;  %v1818_v0 = vpop.f32.mrf.mxu1 }
 0x4e3   : > { %v1963_v34 = vadd.f32 %v1962_v63, %v1818_v0 }
 0x4e7   : > { %3802 = vmatmul.msk.bf16.gmra.mxu3 %vm2061_vm4, %v2010_v50  ;;  %v3718_v50 = vor.u32 %v4171_v29, %v3717_v32 }
 0x4e8   : > { %3765 = vmatmul.msk.bf16.gmra.mxu2 %vm1637_vm2, %v3738_v57 }
 0x4e9   : > { %1847 = vmatmul.bf16.gmra.mxu1 %v3718_v50 }
 0x4ea   : > { %v5253_v62 = vpop.f32.mrf.mxu3  ;;  %v1820_v48 = vpop.f32.mrf.mxu1 }
 0x4eb   : > { %v1965_v11 = vadd.f32 %v1964_v45, %v1820_v48 }
 0x4ed   : > { %v2252_v24 = vpack.c.bf16 %v1965_v11, %v1963_v34 }
 0x4f1   : > { %v1967_v27 = vpop.f32.mrf.mxu2 }
 0x4f2   : > { %v5262_v28 = vpop.f32.mrf.mxu3 }
 0x4f7   : > { %3803 = vmatmul.msk.bf16.gmra.mxu3 %vm2061_vm4, %v2011_v15  ;;  %v3726_v15 = vor.u32 %v4173_v14, %v3725_v56 }
 0x4f9   : > { %1852 = vmatmul.bf16.gmra.mxu1 %v3726_v15  ;;  %v1969_v16 = vpop.f32.mrf.mxu2 }
 0x4fa   : > { %v5274_v43 = vpop.f32.mrf.mxu3  ;;  %v1823_v60 = vpop.f32.mrf.mxu1 }
 0x4fb   : > { %v1968_v58 = vadd.f32 %v1967_v27, %v1823_v60 }
 0x502   : > { %v5283_v19 = vpop.f32.mrf.mxu3  ;;  %v1825_v3 = vpop.f32.mrf.mxu1 }
 0x503   : > { %v1970_v17 = vadd.f32 %v1969_v16, %v1825_v3 }
 0x505   : > { %v2253_v18 = vpack.c.bf16 %v1970_v17, %v1968_v58 }
 0x507   : > { %3804 = vmatmul.msk.bf16.gmra.mxu3 %vm2061_vm4, %v2012_v49  ;;  %v2268_v49 = vld [vmem:[#allocation7 + $0x50] sm:$0x1] }
 0x508   : > { %v2282_v33 = vunpack.c.l.b16 %v2268_v49 }
 0x509   : > { %1857 = vmatmul.bf16.gmra.mxu1 %v3734_v41 }
 0x50a   : > { %v5295_v21 = vpop.f32.mrf.mxu3  ;;  %v2286_v1 = vpack.c.b16 %v2282_v33, %v2282_v33 }
 0x50b   : > { %v1972_v12 = vpop.f32.mrf.mxu2  ;;  %v1828_v39 = vpop.f32.mrf.mxu1 }
 0x50c   : > { %v2318_v6 = vsel %vm2089_vm3, %v2286_v1, 0  ;;  %v1973_v26 = vadd.f32 %v1972_v12, %v1828_v39 }
 0x50d   : > { %2324 = vmatpush.bf16.msrb.mxu3 %v2318_v6 }
 0x511   : > { %2325 = vmatpush.bf16.msrb.mxu3 %v4184_v4 }
 0x512   : > { %v5306_v9 = vpop.f32.mrf.mxu3 }
 0x513   : > { %v1974_v32 = vpop.f32.mrf.mxu2  ;;  %v1830_v29 = vpop.f32.mrf.mxu1 }
 0x514   : > { %v1975_v53 = vadd.f32 %v1974_v32, %v1830_v29 }
 0x515   : > { %2326 = vmatpush.bf16.msrb.mxu3 %v4183_v44 }
 0x516   : > { %v2254_v22 = vpack.c.bf16 %v1975_v53, %v1973_v26 }
 0x517   : > { %3805 = vmatmul.msk.bf16.gmra.mxu3 %vm2061_vm4, %v2013_v37 }
 0x519   : > { %2327 = vmatpush.bf16.msrb.mxu3 %v4182_v13 }
 0x51a   : > { %v5317_v38 = vpop.f32.mrf.mxu3 }
 0x51b   : > { %v1977_v20 = vpop.f32.mrf.mxu2 }
 0x522   : > { %v5321_v55 = vpop.f32.mrf.mxu3 }
 0x523   : > { %v1979_v56 = vpop.f32.mrf.mxu2 }
 0x527   : > { %3806 = vmatmul.msk.bf16.gmra.mxu3 %vm2061_vm4, %v2014_v54 }
 0x52a   : > { %v5325_v10 = vpop.f32.mrf.mxu3 }
 0x52b   : > { %v1982_v61 = vpop.f32.mrf.mxu2 }
 0x532   : > { %v5329_v52 = vpop.f32.mrf.mxu3 }
 0x533   : > { %v1984_v63 = vpop.f32.mrf.mxu2 }
 0x536   : > { %v1833_v50 = vpop.f32.mrf.mxu1 }
 0x537   : > { %3807 = vmatmul.msk.bf16.gmra.mxu3 %vm2061_vm4, %v2015_v40  ;;  %v1978_v33 = vadd.f32 %v1977_v20, %v1833_v50  ;;  %v5365_v20 = vpop.permute.xlu0 %2482 }
 0x53a   : > { %v5333_v30 = vpop.f32.mrf.mxu3 }
 0x53b   : > { %v1987_v6 = vpop.f32.mrf.mxu2 }
 0x53e   : > { %v1835_v15 = vpop.f32.mrf.mxu1 }
 0x53f   : > { %v1980_v0 = vadd.f32 %v1979_v56, %v1835_v15  ;;  %v5372_v53 = vpop.permute.xlu0 %2477 }
 0x541   : > { %v2255_v1 = vpack.c.bf16 %v1980_v0, %v1978_v33 }
 0x542   : > { %v5335_v51 = vpop.f32.mrf.mxu3 }
 0x543   : > { %v1989_v23 = vpop.f32.mrf.mxu2 }
 0x546   : > { %v1838_v36 = vpop.f32.mrf.mxu1 }
 0x547   : > { %3820 = vmatmul.msk.bf16.vlgmr.msrb.gmra.mxu3 %vm2061_vm4, %v2252_v24  ;;  %v1983_v45 = vadd.f32 %v1982_v61, %v1838_v36  ;;  %v5374_v61 = vpop.permute.xlu2 %2472  ;;  %v5378_v0 = vpop.permute.xlu0 %2452 }
 0x54a   : > { %v5338_v47 = vpop.f32.mrf.mxu3 }
 0x54b   : > { %v1992_v42 = vpop.f32.mrf.mxu2 }
 0x54e   : > { %v1840_v41 = vpop.f32.mrf.mxu1 }
 0x54f   : > { %v1985_v48 = vadd.f32 %v1984_v63, %v1840_v41 }
 0x551   : > { %v2256_v27 = vpack.c.bf16 %v1985_v48, %v1983_v45  ;;  %v5385_v45 = vpop.permute.xlu1 %2487 }
 0x552   : > { %v5340_v46 = vpop.f32.mrf.mxu3 }
 0x553   : > { %v1994_v34 = vpop.f32.mrf.mxu2 }
 0x556   : > { %v1843_v4 = vpop.f32.mrf.mxu1 }
 0x557   : > { %3821 = vmatmul.msk.bf16.gmra.mxu3 %vm2061_vm4, %v2253_v18  ;;  %v1988_v3 = vadd.f32 %v1987_v6, %v1843_v4  ;;  %v5380_v6 = vpop.permute.xlu2 %2467 }
 0x55a   : > { %v5343_v14 = vpop.f32.mrf.mxu3 }
 0x55b   : > { %v1997_v32 = vpop.f32.mrf.mxu2 }
 0x55e   : > { %v1845_v54 = vpop.f32.mrf.mxu1 }
 0x55f   : > { %v1990_v40 = vadd.f32 %v1989_v23, %v1845_v54  ;;  %v2448_v54 = vpop.permute.xlu0 %2447 }
 0x561   : > { %v2257_v39 = vpack.c.bf16 %v1990_v40, %v1988_v3 }
 0x562   : > { %v5345_v57 = vpop.f32.mrf.mxu3 }
 0x563   : > { %v1999_v56 = vpop.f32.mrf.mxu2 }
 0x566   : > { %v1848_v16 = vpop.f32.mrf.mxu1 }
 0x567   : > { %3822 = vmatmul.msk.bf16.gmra.mxu3 %vm2061_vm4, %v2254_v22  ;;  %v1993_v50 = vadd.f32 %v1992_v42, %v1848_v16  ;;  %v2443_v16 = vpop.permute.xlu2 %2442 }
 0x56a   : > { %v5348_v49 = vpop.f32.mrf.mxu3 }
 0x56b   : > { %v2002_v63 = vpop.f32.mrf.mxu2 }
 0x56e   : > { %v1850_v11 = vpop.f32.mrf.mxu1 }
 0x56f   : > { %v1995_v58 = vadd.f32 %v1994_v34, %v1850_v11  ;;  %v2423_v34 = vpop.permute.xlu0 %2422  ;;  %v2208_v11 = vadd.f32 %v5333_v30, %v5169_v59  ;;  %v2213_v59 = vadd.f32 %v5338_v47, %v5190_v31 }
 0x571   : > { %v2258_v18 = vpack.c.bf16 %v1995_v58, %v1993_v50 }
 0x572   : > { %v5350_v37 = vpop.f32.mrf.mxu3 }
 0x573   : > { %v2004_v23 = vpop.f32.mrf.mxu2 }
 0x576   : > { %v1853_v29 = vpop.f32.mrf.mxu1 }
 0x577   : > { %3823 = vmatmul.msk.bf16.gmra.mxu3 %vm2061_vm4, %v2255_v1  ;;  %v1998_v36 = vadd.f32 %v1997_v32, %v1853_v29  ;;  %v2438_v32 = vpop.permute.xlu2 %2437 }
 0x57a   : > { %v5353_v44 = vpop.f32.mrf.mxu3 }
 0x57e   : > { %v1855_v15 = vpop.f32.mrf.mxu1 }
 0x57f   : > { %v2000_v22 = vadd.f32 %v1999_v56, %v1855_v15 }
 0x581   : > { %v2259_v1 = vpack.c.bf16 %v2000_v22, %v1998_v36  ;;  %v2418_v36 = vpop.permute.xlu0 %2417  ;;  %v2413_v22 = vpop.permute.xlu2 %2412 }
 0x582   : > { %v5355_v13 = vpop.f32.mrf.mxu3 }
 0x586   : > { %v1858_v41 = vpop.f32.mrf.mxu1 }
 0x587   : > { %3824 = vmatmul.msk.bf16.gmra.mxu3 %vm2061_vm4, %v2256_v27  ;;  %v2003_v27 = vadd.f32 %v2002_v63, %v1858_v41 }
 0x58a   : > { %v5358_v60 = vpop.f32.mrf.mxu3 }
 0x58e   : > { %v1860_v48 = vpop.f32.mrf.mxu1 }
 0x58f   : > { %v2005_v42 = vadd.f32 %v2004_v23, %v1860_v48 }
 0x591   : > { %v2260_v40 = vpack.c.bf16 %v2005_v42, %v2003_v27 }
 0x592   : > { %v5360_v12 = vpop.f32.mrf.mxu3 }
 0x597   : > { %3825 = vmatmul.msk.bf16.gmra.mxu3 %vm2061_vm4, %v2257_v39  ;;  %v2463_v39 = vpop.permute.xlu1 %2462 }
 0x59a   : > { %v5363_v24 = vpop.f32.mrf.mxu3 }
 0x59f   : > { %v2458_v58 = vpop.permute.xlu1 %2457 }
 0x5a2   : > { %v5367_v17 = vpop.f32.mrf.mxu3 }
 0x5a7   : > { %3826 = vmatmul.msk.bf16.gmra.mxu3 %vm2061_vm4, %v2258_v18  ;;  %v2210_v18 = vadd.f32 %v5335_v51, %v5178_v2  ;;  %v2433_v30 = vpop.permute.xlu1 %2432  ;;  %v2215_v2 = vadd.f32 %v5340_v46, %v5199_v7 }
 0x5aa   : > { %v5370_v26 = vpop.f32.mrf.mxu3 }
 0x5af   : > { %v2428_v42 = vpop.permute.xlu1 %2427 }
 0x5b2   : > { %v5376_v33 = vpop.f32.mrf.mxu3 }
 0x5b7   : > { %3827 = vmatmul.msk.bf16.gmra.mxu3 %vm2061_vm4, %v2259_v1 }
 0x5ba   : > { %v5383_v4 = vpop.f32.mrf.mxu3 }
 0x5c2   : > { %v5387_v3 = vpop.f32.mrf.mxu3 }
 0x5c7   : > { %3828 = vmatmul.msk.bf16.gmra.mxu3 %vm2061_vm4, %v2260_v40 }
 0x5ca   : > { %v2329_v29 = vpop.f32.mrf.mxu3 }
 0x5cb   : > { %v2374_v50 = vadd.f32 %v2329_v29, %v2208_v11 }
 0x5cd   : > { %v5394_v63 = vadd.f32 %v2413_v22, %v2374_v50  ;;  %v2218_v50 = vadd.f32 %v5343_v14, %v5211_v8  ;;  %v2225_v8 = vadd.f32 %v5350_v37, %v5241_v25  ;;  %v2233_v37 = vadd.f32 %v5358_v60, %v5274_v43 }
 0x5ce   : > { %v2245_v43 = vadd.f32 %v5376_v33, %v5321_v55  ;;  %v2248_v33 = vadd.f32 %v5383_v4, %v5325_v10  ;;  %v3831_v10 = vld [vmem:[#allocation9] sm:$0xf] }
 0x5d2   : > { %v2331_v56 = vpop.f32.mrf.mxu3 }
 0x5d3   : > { %v2375_v15 = vadd.f32 %v2331_v56, %v2210_v18  ;;  %v2220_v18 = vadd.f32 %v5345_v57, %v5220_v35 }
 0x5d5   : > { %v5396_v41 = vadd.f32 %v2418_v36, %v2375_v15  ;;  %v2223_v36 = vadd.f32 %v5348_v49, %v5232_v5 }
 0x5d7   : > { %v2518_v1 = vpack.c.bf16 %v5396_v41, %v5394_v63  ;;  %v4191_v63 = vld [vmem:[#allocation9 + $0x34] sm:$0xf]  ;;  %v3857_v41 = vld [vmem:[#allocation9 + $0x38] sm:$0xf0] }
 0x5da   : > { %v2334_v48 = vpop.f32.mrf.mxu3 }
 0x5db   : > { %v2376_v23 = vadd.f32 %v2334_v48, %v2213_v59 }
 0x5dd   : > { %v5404_v40 = vadd.f32 %v2423_v34, %v2376_v23 }
 0x5e2   : > { %v2336_v51 = vpop.f32.mrf.mxu3 }
 0x5e3   : > { %v2377_v27 = vadd.f32 %v2336_v51, %v2215_v2  ;;  %v2230_v51 = vadd.f32 %v5355_v13, %v5262_v28 }
 0x5e5   : > { %v5406_v11 = vadd.f32 %v2428_v42, %v2377_v27 }
 0x5e7   : > { %v2519_v29 = vpack.c.bf16 %v5406_v11, %v5404_v40  ;;  %v3847_v11 = vld [vmem:[#allocation9 + $0x20] sm:$0xf] }
 0x5ea   : > { %v2339_v31 = vpop.f32.mrf.mxu3 }
 0x5eb   : > { %v2378_v47 = vadd.f32 %v2339_v31, %v2218_v50 }
 0x5ed   : > { %v5414_v46 = vadd.f32 %v2433_v30, %v2378_v47 }
 0x5f2   : > { %v2341_v56 = vpop.f32.mrf.mxu3 }
 0x5f3   : > { %v2379_v7 = vadd.f32 %v2341_v56, %v2220_v18 }
 0x5f5   : > { %v5416_v15 = vadd.f32 %v2438_v32, %v2379_v7  ;;  %v2228_v32 = vadd.f32 %v5353_v44, %v5253_v62 }
 0x5f7   : > { %v2520_v34 = vpack.c.bf16 %v5416_v15, %v5414_v46  ;;  %v4188_v46 = vld [vmem:[#allocation9 + $0x14] sm:$0xf0] }
 0x5fa   : > { %v2344_v22 = vpop.f32.mrf.mxu3 }
 0x5fb   : > { %v2380_v59 = vadd.f32 %v2344_v22, %v2223_v36 }
 0x5fd   : > { %v2506_v35 = vadd.f32 %v2443_v16, %v2380_v59 }
 0x602   : > { %v2346_v14 = vpop.f32.mrf.mxu3 }
 0x603   : > { %v2381_v48 = vadd.f32 %v2346_v14, %v2225_v8  ;;  %v2498_v8 = vpop.permute.xlu2 %2497 }
 0x605   : > { %v2507_v57 = vadd.f32 %v2448_v54, %v2381_v48  ;;  %v2235_v54 = vadd.f32 %v5360_v12, %v5283_v19  ;;  %v2238_v12 = vadd.f32 %v5363_v24, %v5295_v21  ;;  %v2250_v21 = vadd.f32 %v5387_v3, %v5329_v52  ;;  %v3833_v48 = vld [vmem:[#allocation9 + $0x8] sm:$0xf0]  ;;  %v4186_v52 = vld [vmem:[#allocation9 + $0x4] sm:$0xf0]  ;;  %v4187_v3 = vld [vmem:[#allocation9 + $0x14] sm:$0xf] }
 0x606   : > { %v3832_v4 = vor.u32 %v4186_v52, %v3831_v10 }
 0x607   : > { %v2521_v23 = vpack.c.bf16 %v2507_v57, %v2506_v35 }
 0x60a   : > { %v2349_v30 = vpop.f32.mrf.mxu3 }
 0x60b   : > { %v2382_v2 = vadd.f32 %v2349_v30, %v2228_v32  ;;  %v3839_v30 = vld [vmem:[#allocation9 + $0x10] sm:$0xf] }
 0x60c   : > { %v3840_v15 = vor.u32 %v4188_v46, %v3839_v30 }
 0x60d   : > { %v2508_v49 = vadd.f32 %v5378_v0, %v2382_v2  ;;  %v2243_v0 = vadd.f32 %v5370_v26, %v5317_v38  ;;  %v3849_v2 = vld [vmem:[#allocation9 + $0x28] sm:$0xf0] }
 0x612   : > { %v2351_v27 = vpop.f32.mrf.mxu3 }
 0x613   : > { %v2383_v5 = vadd.f32 %v2351_v27, %v2230_v51  ;;  %v3855_v27 = vld [vmem:[#allocation9 + $0x30] sm:$0xf] }
 0x615   : > { %v2509_v42 = vadd.f32 %v2458_v58, %v2383_v5  ;;  %v2240_v58 = vadd.f32 %v5367_v17, %v5306_v9  ;;  %v4192_v5 = vld [vmem:[#allocation9 + $0x34] sm:$0xf0] }
 0x617   : > { %v2522_v50 = vpack.c.bf16 %v2509_v42, %v2508_v49  ;;  %v3856_v49 = vor.u32 %v4192_v5, %v3855_v27  ;;  %v4193_v42 = vld [vmem:[#allocation9 + $0x44] sm:$0xf]  ;;  %v4220_v27 = vld [vmem:[%s5765_s8 + $0xac] sm:$0xf0]  ;;  %v4219_v5 = vld [vmem:[%s5765_s8 + $0xac] sm:$0xf] }
 0x61a   : > { %v2354_v25 = vpop.f32.mrf.mxu3 }
 0x61b   : > { %v2384_v16 = vadd.f32 %v2354_v25, %v2233_v37  ;;  %v3863_v37 = vld [vmem:[#allocation9 + $0x40] sm:$0xf] }
 0x61d   : > { %v2510_v31 = vadd.f32 %v2463_v39, %v2384_v16 }
 0x622   : > { %v2356_v62 = vpop.f32.mrf.mxu3 }
 0x623   : > { %v2385_v44 = vadd.f32 %v2356_v62, %v2235_v54  ;;  %v4194_v54 = vld [vmem:[#allocation9 + $0x44] sm:$0xf0]  ;;  %v4195_v62 = vld [vmem:[#allocation9 + $0x54] sm:$0xf] }
 0x624   : > { %v3864_v16 = vor.u32 %v4194_v54, %v3863_v37  ;;  %v3932_v37 = vld [vmem:[%s5765_s8 + $0x98] sm:$0xf]  ;;  %v4218_v54 = vld [vmem:[%s5765_s8 + $0x9c] sm:$0xf0] }
 0x625   : > { %v2511_v47 = vadd.f32 %v5380_v6, %v2385_v44  ;;  %v3873_v44 = vld [vmem:[#allocation9 + $0x58] sm:$0xf0] }
 0x627   : > { %v2523_v28 = vpack.c.bf16 %v2511_v47, %v2510_v31  ;;  %v3876_v31 = vor.u32 %v4195_v62, %v3873_v44  ;;  %v3871_v47 = vld [vmem:[#allocation9 + $0x50] sm:$0xf]  ;;  %v3933_v44 = vor.u32 %v4218_v54, %v3932_v37  ;;  %v4207_v37 = vld [vmem:[%s5765_s8 + $0x44] sm:$0xf]  ;;  %v3996_v54 = vld [vmem:[%s5765_s8 + $0x48] sm:$0xf0] }
 0x62a   : > { %v2359_v13 = vpop.f32.mrf.mxu3 }
 0x62b   : > { %v2386_v7 = vadd.f32 %v2359_v13, %v2238_v12  ;;  %v5468_v13 = vld [vmem:[%s5765_s8 + $0x60] sm:$0x33]  ;;  %v4002_v12 = vld [vmem:[%s5765_s8 + $0x50] sm:$0xf] }
 0x62d   : > { %v2512_v9 = vadd.f32 %v5374_v61, %v2386_v7  ;;  %v4185_v61 = vld [vmem:[#allocation9 + $0x4] sm:$0xf]  ;;  %v3994_v7 = vld [vmem:[%s5765_s8 + $0x40] sm:$0xf] }
 0x62e   : > { %v3836_v57 = vor.u32 %v4185_v61, %v3833_v48  ;;  %v3962_v48 = vld [vmem:[%s5765_s8] sm:$0xf] }
 0x632   : > { %v2361_v18 = vpop.f32.mrf.mxu3 }
 0x633   : > { %v2387_v39 = vadd.f32 %v2361_v18, %v2240_v58  ;;  %v2929_v18 = vunpack.c.l.b16 %v5468_v13  ;;  %v4197_v58 = vld [vmem:[#allocation9 + $0x64] sm:$0xf] }
 0x635   : > { %v2513_v38 = vadd.f32 %v5372_v53, %v2387_v39  ;;  %v4210_v39 = vld [vmem:[%s5765_s8 + $0x54] sm:$0xf0] }
 0x637   : > { %v2524_v55 = vpack.c.bf16 %v2513_v38, %v2512_v9  ;;  %v3986_v38 = vld [vmem:[%s5765_s8 + $0x30] sm:$0xf]  ;;  %v3879_v9 = vld [vmem:[#allocation9 + $0x60] sm:$0xf] }
 0x63a   : > { %v2364_v56 = vpop.f32.mrf.mxu3 }
 0x63b   : > { %v2388_v19 = vadd.f32 %v2364_v56, %v2243_v0  ;;  %v2943_v0 = vpack.c.b16 %v2929_v18, %v2929_v18  ;;  %v4216_v18 = vld [vmem:[%s5765_s8 + $0x8c] sm:$0xf0] }
 0x63d   : > { %v2514_v36 = vadd.f32 %v5365_v20, %v2388_v19  ;;  %v2967_v19 = vsel %vm2839_vm5, %v2943_v0, 0 }
 0x642   : > { %v2366_v60 = vpop.f32.mrf.mxu3 }
 0x643   : > { %v2389_v6 = vadd.f32 %v2366_v60, %v2245_v43  ;;  %v3881_v43 = vld [vmem:[#allocation9 + $0x68] sm:$0xf0] }
 0x644   : > { %v3884_v60 = vor.u32 %v4197_v58, %v3881_v43  ;;  %v3926_v43 = vld [vmem:[%s5765_s8 + $0x90] sm:$0xf0] }
 0x645   : > { %v2515_v22 = vadd.f32 %v5385_v45, %v2389_v6  ;;  %v2493_v45 = vpop.permute.xlu1 %2492  ;;  %v4003_v6 = vor.u32 %v4210_v39, %v4002_v12  ;;  %v3916_v39 = vld [vmem:[%s5765_s8 + $0x78] sm:$0xf] }
 0x647   : > { %v2525_v26 = vpack.c.bf16 %v2515_v22, %v2514_v36  ;;  %v4208_v36 = vld [vmem:[%s5765_s8 + $0x44] sm:$0xf0] }
 0x648   : > { %v3995_v22 = vor.u32 %v4208_v36, %v3994_v7  ;;  %v4213_v7 = vld [vmem:[%s5765_s8 + $0x7c] sm:$0xf] }
 0x649   : > { %2635 = vmatpush.bf16.msrb.mxu0 %v2525_v26  ;;  %v4206_v26 = vld [vmem:[%s5765_s8 + $0x34] sm:$0xf0] }
 0x64a   : > { %v2369_v17 = vpop.f32.mrf.mxu3 }
 0x64b   : > { %v2390_v24 = vadd.f32 %v2369_v17, %v2248_v33  ;;  %v4198_v17 = vld [vmem:[#allocation9 + $0x64] sm:$0xf0]  ;;  %v3987_v33 = vor.u32 %v4206_v26, %v3986_v38 }
 0x64d   : > { %2636 = vmatpush.bf16.msrb.mxu0 %v2524_v55  ;;  %v2516_v53 = vadd.f32 %v2493_v45, %v2390_v24  ;;  %v2541_v55 = vld [vmem:[#allocation9 + $0x70] sm:$0xff] }
 0x64e   : > { %v2586_v24 = vunpack.c.h.b16 %v2541_v55  ;;  %v2585_v10 = vunpack.c.l.b16 %v2541_v55  ;;  %v4212_v55 = vld [vmem:[%s5765_s8 + $0x6c] sm:$0xf0] }
 0x650   : > { %v2601_v52 = vpack.c.b16 %v2585_v10, %v2585_v10 }
 0x651   : > { %2637 = vmatpush.bf16.msrb.mxu0 %v2523_v28  ;;  %v4196_v28 = vld [vmem:[#allocation9 + $0x54] sm:$0xf0] }
 0x652   : > { %v2371_v20 = vpop.f32.mrf.mxu3  ;;  %v3872_v56 = vor.u32 %v4196_v28, %v3871_v47  ;;  %v3924_v28 = vld [vmem:[%s5765_s8 + $0x88] sm:$0xf] }
 0x653   : > { %v2391_v59 = vadd.f32 %v2371_v20, %v2250_v21  ;;  %v3880_v21 = vor.u32 %v4198_v17, %v3879_v9  ;;  %v3978_v20 = vld [vmem:[%s5765_s8 + $0x20] sm:$0xf]  ;;  %v3925_v58 = vor.u32 %v4216_v18, %v3924_v28  ;;  %v3908_v17 = vld [vmem:[%s5765_s8 + $0x68] sm:$0xf]  ;;  %v3999_v18 = vor.u32 %v4207_v37, %v3996_v54 }
 0x655   : > { %v2517_v14 = vadd.f32 %v2498_v8, %v2391_v59  ;;  %2638 = vmatpush.bf16.msrb.mxu0 %v2522_v50  ;;  %v3865_v50 = vld [vmem:[#allocation9 + $0x48] sm:$0xf0]  ;;  %v4204_v59 = vld [vmem:[%s5765_s8 + $0x24] sm:$0xf0]  ;;  %v2602_v8 = vpack.c.b16 %v2586_v24, %v2586_v24  ;;  %v3909_v24 = vor.u32 %v4212_v55, %v3908_v17  ;;  %v4225_v17 = vld [vmem:[%s5765_s8 + $0xe4] sm:$0xf] }
 0x656   : > { %v3868_v25 = vor.u32 %v4193_v42, %v3865_v50  ;;  %v3979_v45 = vor.u32 %v4204_v59, %v3978_v20  ;;  %v3942_v50 = vld [vmem:[%s5765_s8 + $0xb0] sm:$0xf0]  ;;  %v4039_v55 = vld [vmem:[%s5765_s8 + $0xe8] sm:$0xf0] }
 0x657   : > { %v2526_v35 = vpack.c.bf16 %v2517_v14, %v2516_v53  ;;  %v3970_v53 = vld [vmem:[%s5765_s8 + $0x10] sm:$0xf]  ;;  %v4202_v14 = vld [vmem:[%s5765_s8 + $0x14] sm:$0xf0]  ;;  %v3910_v20 = vld [vmem:[%s5765_s8 + $0x70] sm:$0xf0] }
 0x658   : > { %v3971_v61 = vor.u32 %v4202_v14, %v3970_v53 }
 0x659   : > { %2639 = vmatpush.bf16.msrb.mxu0 %v2521_v23  ;;  %2690 = vmatpush.bf16.msra.mxu1 %v2526_v35  ;;  %v3841_v23 = vld [vmem:[#allocation9 + $0x18] sm:$0xf0]  ;;  %v4200_v35 = vld [vmem:[%s5765_s8 + $0x4] sm:$0xf0] }
 0x65a   : > { %v3844_v32 = vor.u32 %v4187_v3, %v3841_v23  ;;  %v3905_v3 = vld [vmem:[%s5765_s8 + $0xc8] sm:$0x33] }
 0x65b   : > { %v2801_v23 = vunpack.c.l.b16 %v3905_v3 }
 0x65c   : > { %3885 = vmatmul.msk.bf16.vlgmr.msra.gmra.mxu1 %vm1637_vm2, %v3836_v57  ;;  %v3963_v57 = vor.u32 %v4200_v35, %v3962_v48  ;;  %v4026_v35 = vld [vmem:[%s5765_s8 + $0x130] sm:$0x33] }
 0x65d   : > { %2640 = vmatpush.bf16.msrb.mxu0 %v2520_v34  ;;  %v4189_v34 = vld [vmem:[#allocation9 + $0x24] sm:$0xf]  ;;  %v2815_v30 = vpack.c.b16 %v2801_v23, %v2801_v23  ;;  %v4071_v23 = vld [vmem:[%s5765_s8 + $0x128] sm:$0xf0] }
 0x65e   : > { %v3852_v40 = vor.u32 %v4189_v34, %v3849_v2  ;;  %v3948_v2 = vld [vmem:[%s5765_s8 + $0xb8] sm:$0xf] }
 0x661   : > { %2641 = vmatpush.bf16.msrb.mxu0 %v2519_v29  ;;  %v4190_v29 = vld [vmem:[#allocation9 + $0x24] sm:$0xf0] }
 0x662   : > { %v3848_v51 = vor.u32 %v4190_v29, %v3847_v11  ;;  %v4221_v11 = vld [vmem:[%s5765_s8 + $0xbc] sm:$0xf] }
 0x665   : > { %2642 = vmatpush.bf16.msrb.mxu0 %v2518_v1  ;;  %v3860_v1 = vor.u32 %v4191_v63, %v3857_v41  ;;  %v3950_v63 = vld [vmem:[%s5765_s8 + $0xc0] sm:$0xf0] }
 0x666   : > { %v3953_v41 = vor.u32 %v4221_v11, %v3950_v63  ;;  %v4231_v63 = vld [vmem:[%s5765_s8 + $0x114] sm:$0xf] }
 0x668   : > { %2643 = vmatmul.bf16.vlgmr.msrb.gmra.mxu0 %v3832_v4 }
 0x669   : > { %2973 = vmatpush.bf16.msra.mxu0 %v2967_v19 }
 0x66c   : > { %3886 = vmatmul.msk.bf16.gmra.mxu1 %vm1637_vm2, %v3844_v32  ;;  %v2802_v32 = vunpack.c.h.b16 %v3905_v3  ;;  %v4233_v3 = vld [vmem:[%s5765_s8 + $0x124] sm:$0xf] }
 0x66d   : > { %2974 = vmatpush.bf16.msra.mxu0 %v4003_v6  ;;  %v4214_v6 = vld [vmem:[%s5765_s8 + $0x7c] sm:$0xf0] }
 0x66e   : > { %v2816_v46 = vpack.c.b16 %v2802_v32, %v2802_v32  ;;  %v3917_v36 = vor.u32 %v4214_v6, %v3916_v39  ;;  %v4205_v6 = vld [vmem:[%s5765_s8 + $0x34] sm:$0xf] }
 0x670   : > { %v2844_v34 = vsel %vm2839_vm5, %v2816_v46, 0  ;;  %v2930_v46 = vunpack.c.h.b16 %v5468_v13  ;;  %v4234_v13 = vld [vmem:[%s5765_s8 + $0x124] sm:$0xf0] }
 0x671   : > { %2975 = vmatpush.bf16.msra.mxu0 %v3995_v22  ;;  %2870 = vmatpush.bf16.msra.mxu3 %v2844_v34  ;;  %v3918_v22 = vld [vmem:[%s5765_s8 + $0x80] sm:$0xf0]  ;;  %v4209_v34 = vld [vmem:[%s5765_s8 + $0x54] sm:$0xf] }
 0x672   : > { %v3921_v26 = vor.u32 %v4213_v7, %v3918_v22  ;;  %v3988_v7 = vld [vmem:[%s5765_s8 + $0x38] sm:$0xf0] }
 0x675   : > { %2976 = vmatpush.bf16.msra.mxu0 %v3987_v33  ;;  %2871 = vmatpush.bf16.msra.mxu3 %v3953_v41  ;;  %v4211_v33 = vld [vmem:[%s5765_s8 + $0x6c] sm:$0xf]  ;;  %v4063_v41 = vld [vmem:[%s5765_s8 + $0x118] sm:$0xf0] }
 0x676   : > { %v3913_v59 = vor.u32 %v4211_v33, %v3910_v20  ;;  %v4045_v20 = vld [vmem:[%s5765_s8 + $0xf0] sm:$0xf] }
 0x678   : > { %2648 = vmatmul.bf16.gmra.mxu0 %v3840_v15  ;;  %v2841_v15 = vsel %vm2839_vm5, %v2815_v30, 0  ;;  %v4074_v30 = vor.u32 %v4233_v3, %v4071_v23 }
 0x679   : > { %2977 = vmatpush.bf16.msra.mxu0 %v3979_v45  ;;  %2847 = vmatpush.bf16.msrb.mxu2 %v2841_v15  ;;  %v3072_v15 = vunpack.c.l.b16 %v4026_v35 }
 0x67c   : > { %3887 = vmatmul.msk.bf16.gmra.mxu1 %vm1637_vm2, %v3852_v40  ;;  %v4222_v40 = vld [vmem:[%s5765_s8 + $0xbc] sm:$0xf0] }
 0x67d   : > { %2978 = vmatpush.bf16.msra.mxu0 %v3971_v61 }
 0x681   : > { %2979 = vmatpush.bf16.msra.mxu0 %v3963_v57  ;;  %v3073_v57 = vunpack.c.h.b16 %v4026_v35  ;;  %v4223_v35 = vld [vmem:[%s5765_s8 + $0xd4] sm:$0xf] }
 0x683   : > { %v3087_v10 = vpack.c.b16 %v3073_v57, %v3073_v57 }
 0x688   : > { %2653 = vmatmul.bf16.gmra.mxu0 %v3848_v51  ;;  %v3949_v51 = vor.u32 %v4222_v40, %v3948_v2  ;;  %v4004_v2 = vld [vmem:[%s5765_s8 + $0x58] sm:$0xf0]  ;;  %v4069_v40 = vld [vmem:[%s5765_s8 + $0x120] sm:$0xf] }
 0x68a   : > { %2848 = vmatpush.bf16.msrb.mxu2 %v3949_v51  ;;  %v3086_v51 = vpack.c.b16 %v3072_v15, %v3072_v15 }
 0x68c   : > { %3888 = vmatmul.msk.bf16.gmra.mxu1 %vm1637_vm2, %v3860_v1  ;;  %v3940_v1 = vld [vmem:[%s5765_s8 + $0xa8] sm:$0xf] }
 0x68d   : > { %v3941_v42 = vor.u32 %v4220_v27, %v3940_v1  ;;  %v4066_v27 = vor.u32 %v4231_v63, %v4063_v41 }
 0x68f   : > { %2849 = vmatpush.bf16.msrb.mxu2 %v3941_v42  ;;  %v4007_v42 = vor.u32 %v4209_v34, %v4004_v2  ;;  %v4029_v34 = vld [vmem:[%s5765_s8 + $0xd0] sm:$0xf]  ;;  %v4224_v2 = vld [vmem:[%s5765_s8 + $0xd4] sm:$0xf0] }
 0x693   : > { %2850 = vmatpush.bf16.msrb.mxu2 %v3933_v44  ;;  %v4232_v44 = vld [vmem:[%s5765_s8 + $0x114] sm:$0xf0] }
 0x697   : > { %2851 = vmatpush.bf16.msrb.mxu2 %v3925_v58  ;;  %v4047_v58 = vld [vmem:[%s5765_s8 + $0xf8] sm:$0xf0] }
 0x698   : > { %2658 = vmatmul.bf16.gmra.mxu0 %v3856_v49 }
 0x69b   : > { %2852 = vmatpush.bf16.msrb.mxu2 %v3917_v36  ;;  %v4053_v36 = vld [vmem:[%s5765_s8 + $0x100] sm:$0xf] }
 0x69c   : > { %3889 = vmatmul.msk.bf16.gmra.mxu1 %vm1637_vm2, %v3868_v25  ;;  %v3945_v25 = vor.u32 %v4219_v5, %v3942_v50  ;;  %v4070_v50 = vor.u32 %v4234_v13, %v4069_v40 }
 0x69e   : > { %2872 = vmatpush.bf16.msra.mxu3 %v3945_v25 }
 0x69f   : > { %2853 = vmatpush.bf16.msrb.mxu2 %v3909_v24  ;;  %v3980_v24 = vld [vmem:[%s5765_s8 + $0x28] sm:$0xf0] }
 0x6a8   : > { %2663 = vmatmul.bf16.gmra.mxu0 %v3864_v16  ;;  %v4217_v16 = vld [vmem:[%s5765_s8 + $0x9c] sm:$0xf] }
 0x6ac   : > { %3890 = vmatmul.msk.bf16.gmra.mxu1 %vm1637_vm2, %v3876_v31  ;;  %v3934_v31 = vld [vmem:[%s5765_s8 + $0xa0] sm:$0xf0] }
 0x6ad   : > { %v3937_v47 = vor.u32 %v4217_v16, %v3934_v31  ;;  %v4061_v16 = vld [vmem:[%s5765_s8 + $0x110] sm:$0xf]  ;;  %v4229_v31 = vld [vmem:[%s5765_s8 + $0x104] sm:$0xf] }
 0x6af   : > { %2873 = vmatpush.bf16.msra.mxu3 %v3937_v47  ;;  %v4055_v47 = vld [vmem:[%s5765_s8 + $0x108] sm:$0xf0] }
 0x6b0   : > { %v4058_v28 = vor.u32 %v4229_v31, %v4055_v47 }
 0x6b8   : > { %2668 = vmatmul.bf16.gmra.mxu0 %v3872_v56  ;;  %v4215_v56 = vld [vmem:[%s5765_s8 + $0x8c] sm:$0xf] }
 0x6b9   : > { %v3929_v12 = vor.u32 %v4215_v56, %v3926_v43  ;;  %v4062_v56 = vor.u32 %v4232_v44, %v4061_v16 }
 0x6bb   : > { %2874 = vmatpush.bf16.msra.mxu3 %v3929_v12 }
 0x6bc   : > { %3891 = vmatmul.msk.bf16.gmra.mxu1 %vm1637_vm2, %v3884_v60 }
 0x6bf   : > { %2875 = vmatpush.bf16.msra.mxu3 %v3921_v26  ;;  %v3991_v26 = vor.u32 %v4205_v6, %v3988_v7 }
 0x6c3   : > { %2876 = vmatpush.bf16.msra.mxu3 %v3913_v59  ;;  %v4042_v59 = vor.u32 %v4225_v17, %v4039_v55 }
 0x6c8   : > { %2673 = vmatmul.bf16.gmra.mxu0 %v3880_v21 }
 0x6cc   : > { %3892 = vmatmul.msk.bf16.gmra.mxu1 %vm1637_vm2, %v2602_v8 }
 0x6d8   : > { %2678 = vmatmul.bf16.gmra.mxu0 %v2601_v52 }
 0x6d9   : > { %v2692_v4 = vpop.f32.mrf.mxu1 }
 0x6e1   : > { %v2694_v29 = vpop.f32.mrf.mxu1 }
 0x6e5   : > { %v2644_v49 = vpop.f32.mrf.mxu0 }
 0x6e6   : > { %v2693_v19 = vadd.f32 %v2692_v4, %v2644_v49  ;;  %v3113_v4 = vsel %vm2839_vm5, %v3087_v10, 0  ;;  %v3110_v49 = vsel %vm2839_vm5, %v3086_v51, 0  ;;  %v4037_v10 = vld [vmem:[%s5765_s8 + $0xe0] sm:$0xf] }
 0x6e7   : > { %3139 = vmatpush.bf16.msrb.mxu0 %v3113_v4  ;;  %3116 = vmatpush.bf16.msrb.mxu3 %v3110_v49  ;;  %v4031_v4 = vld [vmem:[%s5765_s8 + $0xd8] sm:$0xf0] }
 0x6e8   : > { %v4034_v3 = vor.u32 %v4223_v35, %v4031_v4 }
 0x6e9   : > { %v2697_v62 = vpop.f32.mrf.mxu1 }
 0x6eb   : > { %3140 = vmatpush.bf16.msrb.mxu0 %v4074_v30  ;;  %3117 = vmatpush.bf16.msrb.mxu3 %v4070_v50  ;;  %v4199_v30 = vld [vmem:[%s5765_s8 + $0x4] sm:$0xf] }
 0x6ed   : > { %v2646_v0 = vpop.f32.mrf.mxu0 }
 0x6ee   : > { %v2695_v60 = vadd.f32 %v2694_v29, %v2646_v0  ;;  %v2944_v29 = vpack.c.b16 %v2930_v46, %v2930_v46  ;;  %v4227_v0 = vld [vmem:[%s5765_s8 + $0xf4] sm:$0xf]  ;;  %v3964_v46 = vld [vmem:[%s5765_s8 + $0x8] sm:$0xf0] }
 0x6ef   : > { %3141 = vmatpush.bf16.msrb.mxu0 %v4066_v27  ;;  %3118 = vmatpush.bf16.msrb.mxu3 %v4062_v56  ;;  %v3967_v40 = vor.u32 %v4199_v30, %v3964_v46 }
 0x6f0   : > { %v5575_v38 = vpack.c.bf16 %v2695_v60, %v2693_v19  ;;  %v2970_v5 = vsel %vm2839_vm5, %v2944_v29, 0  ;;  %v4050_v19 = vor.u32 %v4227_v0, %v4047_v58 }
 0x6f1   : > { %v2699_v9 = vpop.f32.mrf.mxu1  ;;  %2996 = vmatpush.bf16.msra.mxu2 %v2970_v5 }
 0x6f2   : > { %4008 = vmatmul.msk.bf16.vlgmr.msra.gmra.mxu0 %vm2829_vm6, %v5575_v38 }
 0x6f3   : > { %3142 = vmatpush.bf16.msrb.mxu0 %v4058_v28 }
 0x6f5   : > { %v2649_v21 = vpop.f32.mrf.mxu0  ;;  %2997 = vmatpush.bf16.msra.mxu2 %v4007_v42 }
 0x6f6   : > { %v2698_v53 = vadd.f32 %v2697_v62, %v2649_v21  ;;  %v4203_v21 = vld [vmem:[%s5765_s8 + $0x24] sm:$0xf] }
 0x6f7   : > { %3143 = vmatpush.bf16.msrb.mxu0 %v4050_v19 }
 0x6f9   : > { %v2702_v45 = vpop.f32.mrf.mxu1  ;;  %2998 = vmatpush.bf16.msra.mxu2 %v3999_v18 }
 0x6fb   : > { %3144 = vmatpush.bf16.msrb.mxu0 %v4042_v59 }
 0x6fd   : > { %v2651_v8 = vpop.f32.mrf.mxu0  ;;  %2999 = vmatpush.bf16.msra.mxu2 %v3991_v26 }
 0x6fe   : > { %v2700_v14 = vadd.f32 %v2699_v9, %v2651_v8  ;;  %v4230_v9 = vld [vmem:[%s5765_s8 + $0x104] sm:$0xf0]  ;;  %v4228_v8 = vld [vmem:[%s5765_s8 + $0xf4] sm:$0xf0] }
 0x6ff   : > { %v4054_v33 = vor.u32 %v4230_v9, %v4053_v36  ;;  %3145 = vmatpush.bf16.msrb.mxu0 %v4034_v3 }
 0x700   : > { %v5591_v61 = vpack.c.bf16 %v2700_v14, %v2698_v53  ;;  %v4046_v53 = vor.u32 %v4228_v8, %v4045_v20  ;;  %v4201_v14 = vld [vmem:[%s5765_s8 + $0x14] sm:$0xf] }
 0x701   : > { %v2704_v48 = vpop.f32.mrf.mxu1  ;;  %3119 = vmatpush.bf16.msrb.mxu3 %v4054_v33 }
 0x702   : > { %4009 = vmatmul.msk.bf16.gmra.mxu0 %vm2829_vm6, %v5591_v61 }
 0x705   : > { %v2654_v52 = vpop.f32.mrf.mxu0  ;;  %3120 = vmatpush.bf16.msrb.mxu3 %v4046_v53 }
 0x706   : > { %v2703_v11 = vadd.f32 %v2702_v45, %v2654_v52  ;;  %v3983_v45 = vor.u32 %v4203_v21, %v3980_v24  ;;  %v4226_v52 = vld [vmem:[%s5765_s8 + $0xe4] sm:$0xf0] }
 0x708   : > { %v5626_v25 = vpack.c.bf16 %v2703_v11, %v2703_v11  ;;  %3000 = vmatpush.bf16.msra.mxu2 %v3983_v45  ;;  %v4030_v11 = vor.u32 %v4224_v2, %v4029_v34 }
 0x709   : > { %v2707_v32 = vpop.f32.mrf.mxu1 }
 0x70d   : > { %v2656_v1 = vpop.f32.mrf.mxu0 }
 0x70e   : > { %v2705_v60 = vadd.f32 %v2704_v48, %v2656_v1  ;;  %v3972_v48 = vld [vmem:[%s5765_s8 + $0x18] sm:$0xf0] }
 0x70f   : > { %v3975_v23 = vor.u32 %v4201_v14, %v3972_v48 }
 0x711   : > { %v5637_v62 = vpop.f32.mrf.mxu1  ;;  %3001 = vmatpush.bf16.msra.mxu2 %v3975_v23 }
 0x712   : > { %4010 = vmatmul.msk.bf16.gmra.mxu0 %vm2829_vm6, %v5626_v25 }
 0x715   : > { %v2659_v43 = vpop.f32.mrf.mxu0  ;;  %3002 = vmatpush.bf16.msra.mxu2 %v3967_v40  ;;  %v3184_v40 = vpop.permute.xlu1 %3183 }
 0x716   : > { %v2708_v12 = vadd.f32 %v2707_v32, %v2659_v43  ;;  %v4038_v32 = vor.u32 %v4226_v52, %v4037_v10  ;;  %v3179_v52 = vpop.permute.xlu0 %3178 }
 0x718   : > { %v2747_v39 = vpack.c.bf16 %v2708_v12, %v2705_v60  ;;  %3121 = vmatpush.bf16.msrb.mxu3 %v4038_v32 }
 0x719   : > { %v2712_v22 = vpop.f32.mrf.mxu1 }
 0x71a   : > { %3954 = vmatmul.msk.bf16.vlgmr.msrb.gmra.mxu2 %vm2829_vm6, %v2747_v39  ;;  %3957 = vmatmul.msk.bf16.vlgmr.msra.gmra.mxu3 %vm2829_vm6, %v2747_v39 }
 0x71c   : > { %3122 = vmatpush.bf16.msrb.mxu3 %v4030_v11 }
 0x71d   : > { %v2661_v57 = vpop.f32.mrf.mxu0 }
 0x71e   : > { %v2710_v51 = vadd.f32 %v5637_v62, %v2661_v57 }
 0x721   : > { %v2714_v15 = vpop.f32.mrf.mxu1 }
 0x725   : > { %v2664_v29 = vpop.f32.mrf.mxu0 }
 0x726   : > { %v2713_v13 = vadd.f32 %v2712_v22, %v2664_v29 }
 0x728   : > { %v2748_v63 = vpack.c.bf16 %v2713_v13, %v2710_v51 }
 0x729   : > { %v2717_v41 = vpop.f32.mrf.mxu1 }
 0x72a   : > { %3955 = vmatmul.msk.bf16.gmra.mxu2 %vm2829_vm6, %v2748_v63  ;;  %3958 = vmatmul.msk.bf16.gmra.mxu3 %vm2829_vm6, %v2748_v63 }
 0x72d   : > { %v2666_v1 = vpop.f32.mrf.mxu0 }
 0x72e   : > { %v2715_v5 = vadd.f32 %v2714_v15, %v2666_v1 }
 0x730   : > { %v2749_v42 = vpack.c.bf16 %v2715_v5, %v2715_v5 }
 0x731   : > { %v2719_v27 = vpop.f32.mrf.mxu1 }
 0x735   : > { %v2669_v49 = vpop.f32.mrf.mxu0 }
 0x736   : > { %v2718_v37 = vadd.f32 %v2717_v41, %v2669_v49  ;;  %v3189_v49 = vpop.permute.xlu2 %3188 }
 0x739   : > { %v2722_v50 = vpop.f32.mrf.mxu1 }
 0x73a   : > { %3956 = vmatmul.msk.bf16.gmra.mxu2 %vm2829_vm6, %v2749_v42  ;;  %3959 = vmatmul.msk.bf16.gmra.mxu3 %vm2829_vm6, %v2749_v42 }
 0x73d   : > { %v2671_v54 = vpop.f32.mrf.mxu0 }
 0x73e   : > { %v2720_v16 = vadd.f32 %v2719_v27, %v2671_v54 }
 0x740   : > { %v3018_v62 = vpack.c.bf16 %v2720_v16, %v2718_v37 }
 0x741   : > { %v2724_v44 = vpop.f32.mrf.mxu1 }
 0x742   : > { %4078 = vmatmul.msk.bf16.vlgmr.msrb.gmra.mxu0 %vm2829_vm6, %v3018_v62 }
 0x745   : > { %v2674_v31 = vpop.f32.mrf.mxu0 }
 0x746   : > { %v2723_v28 = vadd.f32 %v2722_v50, %v2674_v31 }
 0x749   : > { %v2727_v47 = vpop.f32.mrf.mxu1 }
 0x74a   : > { %4011 = vmatmul.msk.bf16.vlgmr.msra.gmra.mxu2 %vm2829_vm6, %v5575_v38  ;;  %4075 = vmatmul.msk.bf16.vlgmr.msrb.gmra.mxu3 %vm2829_vm6, %v3018_v62 }
 0x74d   : > { %v2676_v18 = vpop.f32.mrf.mxu0 }
 0x74e   : > { %v2725_v56 = vadd.f32 %v2724_v44, %v2676_v18 }
 0x750   : > { %v3019_v0 = vpack.c.bf16 %v2725_v56, %v2723_v28  ;;  %v3194_v28 = vpop.permute.xlu0 %3193 }
 0x751   : > { %v2729_v58 = vpop.f32.mrf.mxu1 }
 0x752   : > { %4079 = vmatmul.msk.bf16.gmra.mxu0 %vm2829_vm6, %v3019_v0 }
 0x755   : > { %v2679_v43 = vpop.f32.mrf.mxu0 }
 0x756   : > { %v2728_v19 = vadd.f32 %v2727_v47, %v2679_v43 }
 0x758   : > { %v3020_v12 = vpack.c.bf16 %v2728_v19, %v2728_v19 }
 0x75a   : > { %4012 = vmatmul.msk.bf16.gmra.mxu2 %vm2829_vm6, %v5591_v61  ;;  %4076 = vmatmul.msk.bf16.gmra.mxu3 %vm2829_vm6, %v3019_v0 }
 0x75d   : > { %v2681_v60 = vpop.f32.mrf.mxu0 }
 0x762   : > { %4080 = vmatmul.msk.bf16.gmra.mxu0 %vm2829_vm6, %v3020_v12 }
 0x76a   : > { %4013 = vmatmul.msk.bf16.gmra.mxu2 %vm2829_vm6, %v5626_v25  ;;  %4077 = vmatmul.msk.bf16.gmra.mxu3 %vm2829_vm6, %v3020_v12 }
 0x76f   : > { %v2981_v38 = vpop.f32.mrf.mxu0 }
 0x777   : > { %v2983_v39 = vpop.f32.mrf.mxu0 }
 0x77f   : > { %v2986_v6 = vpop.f32.mrf.mxu0 }
 0x787   : > { %v2988_v7 = vpop.f32.mrf.mxu0 }
 0x78f   : > { %v5735_v36 = vpop.f32.mrf.mxu0 }
 0x797   : > { %v2993_v61 = vpop.f32.mrf.mxu0 }
 0x79d   : > { %v2855_v22 = vpop.f32.mrf.mxu2  ;;  %v2878_v26 = vpop.f32.mrf.mxu3 }
 0x79e   : > { %v2982_v14 = vadd.f32 %v2981_v38, %v2855_v22 }
 0x7a5   : > { %v2857_v9 = vpop.f32.mrf.mxu2  ;;  %v2880_v17 = vpop.f32.mrf.mxu3 }
 0x7a6   : > { %v2984_v30 = vadd.f32 %v2983_v39, %v2857_v9  ;;  %v3199_v39 = vpop.permute.xlu1 %3198 }
 0x7ad   : > { %v2860_v55 = vpop.f32.mrf.mxu2  ;;  %v2883_v33 = vpop.f32.mrf.mxu3 }
 0x7ae   : > { %v2987_v63 = vadd.f32 %v2986_v6, %v2860_v55 }
 0x7b5   : > { %v2862_v21 = vpop.f32.mrf.mxu2  ;;  %v2885_v24 = vpop.f32.mrf.mxu3 }
 0x7b6   : > { %v2989_v16 = vadd.f32 %v2988_v7, %v2862_v21 }
 0x7bd   : > { %v2865_v20 = vpop.f32.mrf.mxu2  ;;  %v2888_v25 = vpop.f32.mrf.mxu3 }
 0x7be   : > { %v2992_v43 = vadd.f32 %v5735_v36, %v2865_v20 }
 0x7bf   : > { %v3147_v59 = vpop.f32.mrf.mxu0 }
 0x7c5   : > { %v2867_v45 = vpop.f32.mrf.mxu2  ;;  %v2890_v8 = vpop.f32.mrf.mxu3 }
 0x7c7   : > { %v3149_v53 = vpop.f32.mrf.mxu0 }
 0x7cd   : > { %v3004_v48 = vpop.f32.mrf.mxu2  ;;  %v3124_v35 = vpop.f32.mrf.mxu3 }
 0x7ce   : > { %v3005_v57 = vadd.f32 %v3004_v48, %v2878_v26  ;;  %v3161_v10 = vadd.f32 %v3124_v35, %v2982_v14 }
 0x7cf   : > { %v3152_v4 = vpop.f32.mrf.mxu0 }
 0x7d0   : > { %v3201_v3 = vadd.f32 %v3179_v52, %v3161_v10  ;;  %v3162_v23 = vadd.f32 %v3147_v59, %v3005_v57 }
 0x7d2   : > { %3211 = vst [vmem:[%s5741_s15] sm:$0xff] %v3201_v3  ;;  %v3202_v32 = vadd.f32 %v3179_v52, %v3162_v23 }
 0x7d4   : > { %3212 = vst [vmem:[%s5741_s15 + $0x8] sm:$0xff] %v3202_v32 }
 0x7d5   : > { %v3006_v46 = vpop.f32.mrf.mxu2  ;;  %v3126_v15 = vpop.f32.mrf.mxu3 }
 0x7d6   : > { %v3007_v34 = vadd.f32 %v3006_v46, %v2880_v17  ;;  %v3163_v2 = vadd.f32 %v3126_v15, %v2984_v30 }
 0x7d7   : > { %v3154_v11 = vpop.f32.mrf.mxu0 }
 0x7d8   : > { %v3203_v29 = vadd.f32 %v3184_v40, %v3163_v2  ;;  %v3164_v51 = vadd.f32 %v3149_v53, %v3007_v34 }
 0x7da   : > { %3213 = vst [vmem:[%s5741_s15 + $0x10] sm:$0xff] %v3203_v29  ;;  %v3204_v13 = vadd.f32 %v3184_v40, %v3164_v51 }
 0x7dc   : > { %3214 = vst [vmem:[%s5741_s15 + $0x18] sm:$0xff] %v3204_v13 }
 0x7dd   : > { %v3009_v41 = vpop.f32.mrf.mxu2  ;;  %v3129_v1 = vpop.f32.mrf.mxu3 }
 0x7de   : > { %v3010_v27 = vadd.f32 %v3009_v41, %v2883_v33  ;;  %v3165_v5 = vadd.f32 %v3129_v1, %v2987_v63 }
 0x7df   : > { %v3157_v42 = vpop.f32.mrf.mxu0 }
 0x7e0   : > { %v3205_v50 = vadd.f32 %v3189_v49, %v3165_v5  ;;  %v3166_v37 = vadd.f32 %v3152_v4, %v3010_v27 }
 0x7e2   : > { %3215 = vst [vmem:[%s5741_s15 + $0x20] sm:$0xff] %v3205_v50  ;;  %v3206_v54 = vadd.f32 %v3189_v49, %v3166_v37 }
 0x7e4   : > { %3216 = vst [vmem:[%s5741_s15 + $0x28] sm:$0xff] %v3206_v54 }
 0x7e5   : > { %v3011_v62 = vpop.f32.mrf.mxu2  ;;  %v3131_v44 = vpop.f32.mrf.mxu3 }
 0x7e6   : > { %v3012_v31 = vadd.f32 %v3011_v62, %v2885_v24  ;;  %v3167_v47 = vadd.f32 %v3131_v44, %v2989_v16 }
 0x7e7   : > { %v3159_v18 = vpop.f32.mrf.mxu0 }
 0x7e8   : > { %v3207_v56 = vadd.f32 %v3194_v28, %v3167_v47  ;;  %v3168_v0 = vadd.f32 %v3154_v11, %v3012_v31 }
 0x7ea   : > { %3217 = vst [vmem:[%s5741_s15 + $0x30] sm:$0xff] %v3207_v56  ;;  %v3208_v58 = vadd.f32 %v3194_v28, %v3168_v0 }
 0x7ec   : > { %3218 = vst [vmem:[%s5741_s15 + $0x38] sm:$0xff] %v3208_v58 }
 0x7ed   : > { %v3014_v19 = vpop.f32.mrf.mxu2  ;;  %v3134_v60 = vpop.f32.mrf.mxu3 }
 0x7ee   : > { %v3015_v12 = vadd.f32 %v3014_v19, %v2888_v25  ;;  %v3169_v38 = vadd.f32 %v3134_v60, %v2992_v43 }
 0x7f0   : > { %v3209_v6 = vadd.f32 %v3199_v39, %v3169_v38  ;;  %v3170_v7 = vadd.f32 %v3157_v42, %v3015_v12 }
 0x7f2   : > { %3219 = vst [vmem:[%s5741_s15 + $0x40] sm:$0xff] %v3209_v6  ;;  %v3210_v61 = vadd.f32 %v3199_v39, %v3170_v7 }
 0x7f4   : > { %3220 = vst [vmem:[%s5741_s15 + $0x48] sm:$0xff] %v3210_v61 }
 0x7f5   : > { %v3016_v22 = vpop.f32.mrf.mxu2  ;;  %v3136_v26 = vpop.f32.mrf.mxu3 }
 0x7f6 PF: > { %s23_s13 = sadd.s32 1, %s4473_s13  }
 0x7f7   : > { %p20_p7 = scmp.ge.s32.totalorder %s23_s13, 4  }
 0x7f9   :  { %22 = sbr.rel (!%p20_p7) target bundleno = 3 (0x3), region = 117 }
 0x7fe   :  { %3242 = vsyncpa [#allocation3], 1 }
 0x7ff   :  { %3244 = vsyncpa [#allocation3 + $0x1], 1 }
 0x800   :  { %3245 = vsyncpa [#allocation5], 1 }
 0x801   :  { %3246 = vsyncpa [#allocation8], 1 }

</bundles_post_ra>
